<compile_context>
chip_gen: v7x
topology: tpu7x:2x2x1
jax: 0.10.0
libtpu: 0.0.40
codegen_flags: <defaults>
</compile_context>

<pallas_src>
import jax
import jax.numpy as jnp
import numpy as np
from jax.experimental import pallas as pl
from jax.experimental.pallas import tpu as pltpu

LEAKY_SLOPE = 0.01   # nn.LeakyReLU() default negative_slope
BN_EPS = 1e-5        # nn.BatchNorm2d default eps


def _round_up(x, m):
    return (x + m - 1) // m * m


def _vmem_limit_bytes():
    """Per-generation VMEM limit (~3/4 of physical); None -> compiler default."""
    try:
        cap = int(pltpu.get_tpu_info().vmem_capacity_bytes)
        return min(cap * 3 // 4, 96 * 1024 * 1024)
    except Exception:
        return None


def _make_down_kernel(Wpad, TH, HW1, HW2, LP2, Cmid, transpose_out):
    """Kernel body for one (batch, row-block) tile (flattened padded-plane layout)."""
    TAIL = LP2 - (TH + 3) * Wpad   # scratch tail rows (== 8)

    def conv3x3(src_ref, dx0, w_ref, n_out):
        # 3 dy-grouped MXU dots, K = 3*C each; dy offsets are 8-aligned views,
        # only the dx!=center slices need a sublane relayout.
        acc = None
        for dy in range(3):
            taps = jnp.concatenate(
                [src_ref[pl.ds(dy * Wpad + dx0 + t, n_out), :] for t in range(3)],
                axis=-1)
            part = jnp.dot(taps, w_ref[dy], preferred_element_type=jnp.float32)
            acc = part if acc is None else acc + part
        return acc

    def kernel(x_ref, mask_ref, w1_ref, b1_ref, w2_ref, b2_ref, o_ref, p2_ref):
        # ---- conv1 (3x3, pad=1, no bias) + BN1 (folded) + LeakyReLU over TH+2 rows
        # (one halo row on each side feeds conv2's row taps).
        act = conv3x3(x_ref, 0, w1_ref, HW1) + b1_ref[...]
        act = jnp.maximum(act, LEAKY_SLOPE * act)
        # Zero garbage columns / out-of-image halo rows / ragged-tail rows so they
        # act as conv2's zero padding (mask precomputed per row-block in the wrapper).
        act = act * mask_ref[...]

        # ---- conv2 plane scratch: act stored sublane-aligned at row offset Wpad;
        # row 0 and the small tail are zero pad (rest fully overwritten every step).
        p2_ref[pl.ds(0, Wpad), :] = jnp.zeros((Wpad, Cmid), p2_ref.dtype)
        p2_ref[pl.ds((TH + 3) * Wpad, TAIL), :] = jnp.zeros((TAIL, Cmid), p2_ref.dtype)
        p2_ref[pl.ds(Wpad, HW1), :] = act.astype(p2_ref.dtype)

        # ---- conv2 + BN2 + LeakyReLU over the TH output rows of this block
        act2 = conv3x3(p2_ref, Wpad - 1, w2_ref, HW2) + b2_ref[...]
        act2 = jnp.maximum(act2, LEAKY_SLOPE * act2)

        if transpose_out:
            # small Cout: lane-dense (Cout, HW) store
            o_ref[...] = jnp.transpose(act2, (1, 0)).astype(o_ref.dtype)
        else:
            # Cout >= 128: (HW, Cout) is already lane-dense; no transpose
            o_ref[...] = act2.astype(o_ref.dtype)

    return kernel


def down_forward(x, params, row_block=None):
    """Down: MaxPool2d(2) -> (Conv3x3 -> BN -> LeakyReLU) x 2. NCHW in / NCHW out."""
    N, Cin, H, W = x.shape
    w1, w2 = params["w1"], params["w2"]
    Cmid, Cout = w1.shape[0], w2.shape[0]
    Hp, Wp = H // 2, W // 2

    TH = min(row_block if row_block else 32, Hp)     # pooled output rows per block
    R = -(-Hp // TH)                                 # number of row blocks
    Hp_pad = R * TH
    Wpad = _round_up(Wp + 2, 8)                      # row pitch incl. conv padding
    HW1 = (TH + 2) * Wpad                            # conv1 act rows (incl. halos)
    HW2 = TH * Wpad                                  # conv2 output rows
    LBLK = (TH + 4) * Wpad + 8                       # input block length (+ read slack)
    LP2 = (TH + 3) * Wpad + 8                        # conv2 plane scratch length

    # ---- glue (fused XLA): 2x2 max-pool, NHWC, conv zero-pad, row-block extraction.
    xh = jnp.transpose(x, (0, 2, 3, 1))                                   # N,H,W,C
    pooled = xh.reshape(N, Hp, 2, Wp, 2, Cin).max(axis=(2, 4))            # N,Hp,Wp,C
    pooled = pooled.astype(jnp.bfloat16)
    padded = jnp.pad(pooled, ((0, 0), (2, Hp_pad - Hp + 2),
                              (1, Wpad - Wp - 1), (0, 0)))                # zero halos
    blocks = jnp.stack([padded[:, r * TH:r * TH + TH + 4] for r in range(R)], axis=1)
    blocks = blocks.reshape(N, R, (TH + 4) * Wpad, Cin)
    blocks = jnp.pad(blocks, ((0, 0), (0, 0), (0, LBLK - (TH + 4) * Wpad), (0, 0)))

    # ---- per-block activation mask: zeroes garbage columns, out-of-image halo rows
    # and ragged-tail rows (serves as conv2's zero padding).  Shape (R, HW1, 1) f32.
    ga = jnp.arange(R)[:, None] * TH - 1 + jnp.arange(TH + 2)[None, :]    # global rows
    row_ok = (ga >= 0) & (ga < Hp)                                        # (R, TH+2)
    col_ok = jnp.arange(Wpad) < Wp                                        # (Wpad,)
    mask = (row_ok[:, :, None] & col_ok[None, None, :]).astype(jnp.float32)
    mask = mask.reshape(R, HW1, 1)

    # ---- fold BN scale into conv weights (inference-mode BN), dy-grouped tap packing.
    def fold(w, g, b, m, v):
        s = g / jnp.sqrt(v + BN_EPS)                       # (O,)
        w_eff = w * s[:, None, None, None]                 # OIHW
        O, I = w.shape[0], w.shape[1]
        w_pk = jnp.transpose(w_eff, (2, 3, 1, 0)).reshape(3, 3 * I, O)    # (ky, kx*I, O)
        bias = (b - m * s).reshape(1, O).astype(jnp.float32)
        return w_pk.astype(jnp.bfloat16), bias

    w1p, b1v = fold(w1, params["g1"], params["b1"], params["m1"], params["v1"])
    w2p, b2v = fold(w2, params["g2"], params["b2"], params["m2"], params["v2"])

    transpose_out = Cout < 128
    kernel = _make_down_kernel(Wpad, TH, HW1, HW2, LP2, Cmid, transpose_out)

    if transpose_out:
        out_shape = (N, R, Cout, HW2)
        out_block = (None, None, Cout, HW2)
    else:
        out_shape = (N, R, HW2, Cout)
        out_block = (None, None, HW2, Cout)

    cp_kwargs = dict(dimension_semantics=("parallel", "parallel"))
    lim = _vmem_limit_bytes()
    if lim is not None:
        cp_kwargs["vmem_limit_bytes"] = lim

    out_flat = pl.pallas_call(
        kernel,
        out_shape=jax.ShapeDtypeStruct(out_shape, jnp.bfloat16),
        grid=(N, R),
        in_specs=[
            pl.BlockSpec((None, None, LBLK, Cin), lambda n, r: (n, r, 0, 0)),
            pl.BlockSpec((None, HW1, 1), lambda n, r: (r, 0, 0)),
            pl.BlockSpec((3, 3 * Cin, Cmid), lambda n, r: (0, 0, 0)),
            pl.BlockSpec((1, Cmid), lambda n, r: (0, 0)),
            pl.BlockSpec((3, 3 * Cmid, Cout), lambda n, r: (0, 0, 0)),
            pl.BlockSpec((1, Cout), lambda n, r: (0, 0)),
        ],
        out_specs=pl.BlockSpec(out_block, lambda n, r: (n, r, 0, 0)),
        scratch_shapes=[pltpu.VMEM((LP2, Cmid), jnp.bfloat16)],
        compiler_params=pltpu.CompilerParams(**cp_kwargs),
    )(blocks, mask, w1p, b1v, w2p, b2v)

    # reassemble NCHW, trim garbage columns / ragged rows, restore f32
    if transpose_out:
        out = out_flat.reshape(N, R, Cout, TH, Wpad)
        out = jnp.transpose(out, (0, 2, 1, 3, 4)).reshape(N, Cout, Hp_pad, Wpad)
    else:
        out = out_flat.reshape(N, R, TH, Wpad, Cout)
        out = jnp.transpose(out, (0, 4, 1, 2, 3)).reshape(N, Cout, Hp_pad, Wpad)
    return out[:, :, :Hp, :Wp].astype(jnp.float32)


def down_reference(x, params):
    """Pure-JAX f32 reference for validation."""
    N, C, H, W = x.shape
    xp = x.reshape(N, C, H // 2, 2, W // 2, 2).max(axis=(3, 5))

    def conv_bn_lrelu(y, w, g, b, m, v):
        out = jax.lax.conv_general_dilated(
            y, w, window_strides=(1, 1), padding=((1, 1), (1, 1)),
            dimension_numbers=("NCHW", "OIHW", "NCHW"),
            precision=jax.lax.Precision.HIGHEST)
        s = g / jnp.sqrt(v + BN_EPS)
        out = out * s[None, :, None, None] + (b - m * s)[None, :, None, None]
        return jnp.where(out >= 0, out, LEAKY_SLOPE * out)

    y = conv_bn_lrelu(xp, params["w1"], params["g1"], params["b1"],
                      params["m1"], params["v1"])
    y = conv_bn_lrelu(y, params["w2"], params["g2"], params["b2"],
                      params["m2"], params["v2"])
    return y


def _make_params(key, Cin, Cmid, Cout):
    ks = jax.random.split(key, 10)
    return dict(
        w1=0.2 * jax.random.normal(ks[0], (Cmid, Cin, 3, 3), jnp.float32),
        g1=1.0 + 0.1 * jax.random.normal(ks[1], (Cmid,), jnp.float32),
        b1=0.1 * jax.random.normal(ks[2], (Cmid,), jnp.float32),
        m1=0.1 * jax.random.normal(ks[3], (Cmid,), jnp.float32),
        v1=jax.random.uniform(ks[4], (Cmid,), jnp.float32, 0.5, 1.5),
        w2=0.2 * jax.random.normal(ks[5], (Cout, Cmid, 3, 3), jnp.float32),
        g2=1.0 + 0.1 * jax.random.normal(ks[6], (Cout,), jnp.float32),
        b2=0.1 * jax.random.normal(ks[7], (Cout,), jnp.float32),
        m2=0.1 * jax.random.normal(ks[8], (Cout,), jnp.float32),
        v2=jax.random.uniform(ks[9], (Cout,), jnp.float32, 0.5, 1.5),
    )


if __name__ == "__main__":
    N, Cin, Cout, H, W = 2, 4, 8, 16, 16   # DoubleConv default: mid_channels = out_channels

    key = jax.random.PRNGKey(0)
    kx, kp, kp_big = jax.random.split(key, 3)
    x = jax.random.normal(kx, (N, Cin, H, W), jnp.float32)
    params = _make_params(kp, Cin, Cout, Cout)

    ref = jax.block_until_ready(down_reference(x, params))

    # Primary run: even row-block split (R=2), small-Cout lane-dense (transposed) path.
    out = jax.block_until_ready(down_forward(x, params, row_block=4))
    assert out.shape == (N, Cout, H // 2, W // 2), out.shape
    np.testing.assert_allclose(np.asarray(out), np.asarray(ref), atol=5e-2, rtol=5e-2)

    # Ragged row-block split (Hp % row_block != 0) exercises tail-row masking.
    out_r = jax.block_until_ready(down_forward(x, params, row_block=3))
    np.testing.assert_allclose(np.asarray(out_r), np.asarray(ref), atol=5e-2, rtol=5e-2)

    # Wide-channel config exercises the no-transpose (NHWC) output path.
    Cbig = 128
    params_big = _make_params(kp_big, Cin, Cbig, Cbig)
    out_b = jax.block_until_ready(down_forward(x, params_big, row_block=4))
    ref_b = jax.block_until_ready(down_reference(x, params_big))
    np.testing.assert_allclose(np.asarray(out_b), np.asarray(ref_b), atol=7.5e-2, rtol=5e-2)

    print("KERNEL_OK")
</pallas_src>

<mosaic_0001>
module attributes {stable_mosaic.version = 11 : i64} {
  func.func @kernel(%arg0: i32, %arg1: i32, %arg2: memref<1x1x136x4xbf16, #tpu.memory_space<vmem>>, %arg3: memref<1x96x1xf32, #tpu.memory_space<vmem>>, %arg4: memref<3x12x8xbf16, #tpu.memory_space<vmem>>, %arg5: memref<1x8xf32, #tpu.memory_space<vmem>>, %arg6: memref<3x24x8xbf16, #tpu.memory_space<vmem>>, %arg7: memref<1x8xf32, #tpu.memory_space<vmem>>, %arg8: memref<1x1x8x64xbf16, #tpu.memory_space<vmem>>, %arg9: memref<120x8xbf16, #tpu.memory_space<vmem>>) attributes {dimension_semantics = [#tpu.dimension_semantics<parallel>, #tpu.dimension_semantics<parallel>], iteration_bounds = array<i64: 2, 2>, scalar_prefetch = 0 : i64, scratch_operands = 1 : i64, tpu.core_type = #tpu.core_type<tc>, window_params = [{transform_indices = @transform_0, window_bounds = array<i64: 1, 1, 136, 4>}, {transform_indices = @transform_1, window_bounds = array<i64: 1, 96, 1>}, {pipeline_mode = #tpu.pipeline_mode<synchronous>, transform_indices = @transform_2, window_bounds = array<i64: 3, 12, 8>}, {pipeline_mode = #tpu.pipeline_mode<synchronous>, transform_indices = @transform_3, window_bounds = array<i64: 1, 8>}, {pipeline_mode = #tpu.pipeline_mode<synchronous>, transform_indices = @transform_4, window_bounds = array<i64: 3, 24, 8>}, {pipeline_mode = #tpu.pipeline_mode<synchronous>, transform_indices = @transform_5, window_bounds = array<i64: 1, 8>}, {transform_indices = @transform_6, window_bounds = array<i64: 1, 1, 8, 64>}]} {
    %c0 = arith.constant 0 : index
    %c0_0 = arith.constant 0 : index
    %c0_1 = arith.constant 0 : index
    %c0_2 = arith.constant 0 : index
    %0 = vector.load %arg2[%c0, %c0_0, %c0_1, %c0_2] : memref<1x1x136x4xbf16, #tpu.memory_space<vmem>>, vector<1x1x96x4xbf16>
    %1 = vector.shape_cast %0 : vector<1x1x96x4xbf16> to vector<96x4xbf16>
    %c0_3 = arith.constant 0 : index
    %c0_4 = arith.constant 0 : index
    %c1 = arith.constant 1 : index
    %c0_5 = arith.constant 0 : index
    %2 = vector.load %arg2[%c0_3, %c0_4, %c1, %c0_5] : memref<1x1x136x4xbf16, #tpu.memory_space<vmem>>, vector<1x1x96x4xbf16>
    %3 = vector.shape_cast %2 : vector<1x1x96x4xbf16> to vector<96x4xbf16>
    %c0_6 = arith.constant 0 : index
    %c0_7 = arith.constant 0 : index
    %c2 = arith.constant 2 : index
    %c0_8 = arith.constant 0 : index
    %4 = vector.load %arg2[%c0_6, %c0_7, %c2, %c0_8] : memref<1x1x136x4xbf16, #tpu.memory_space<vmem>>, vector<1x1x96x4xbf16>
    %5 = vector.shape_cast %4 : vector<1x1x96x4xbf16> to vector<96x4xbf16>
    %6 = tpu.concatenate %1, %3, %5 in 1 : vector<96x4xbf16>, vector<96x4xbf16>, vector<96x4xbf16> -> vector<96x12xbf16>
    %c0_9 = arith.constant 0 : index
    %c0_10 = arith.constant 0 : index
    %c0_11 = arith.constant 0 : index
    %7 = vector.load %arg4[%c0_9, %c0_10, %c0_11] : memref<3x12x8xbf16, #tpu.memory_space<vmem>>, vector<1x12x8xbf16>
    %8 = vector.shape_cast %7 : vector<1x12x8xbf16> to vector<12x8xbf16>
    %cst = arith.constant dense<0.000000e+00> : vector<96x8xf32>
    %9 = tpu.matmul %6, %8, %cst {dimension_numbers = #tpu.dot_dimension_numbers<[1], [0], [0], [1], [0, 0, 1, 1], [], []>} : vector<96x12xbf16>, vector<12x8xbf16>, vector<96x8xf32> -> vector<96x8xf32>
    %c0_12 = arith.constant 0 : index
    %c0_13 = arith.constant 0 : index
    %c16 = arith.constant 16 : index
    %c0_14 = arith.constant 0 : index
    %10 = vector.load %arg2[%c0_12, %c0_13, %c16, %c0_14] : memref<1x1x136x4xbf16, #tpu.memory_space<vmem>>, vector<1x1x96x4xbf16>
    %11 = vector.shape_cast %10 : vector<1x1x96x4xbf16> to vector<96x4xbf16>
    %c0_15 = arith.constant 0 : index
    %c0_16 = arith.constant 0 : index
    %c17 = arith.constant 17 : index
    %c0_17 = arith.constant 0 : index
    %12 = vector.load %arg2[%c0_15, %c0_16, %c17, %c0_17] : memref<1x1x136x4xbf16, #tpu.memory_space<vmem>>, vector<1x1x96x4xbf16>
    %13 = vector.shape_cast %12 : vector<1x1x96x4xbf16> to vector<96x4xbf16>
    %c0_18 = arith.constant 0 : index
    %c0_19 = arith.constant 0 : index
    %c18 = arith.constant 18 : index
    %c0_20 = arith.constant 0 : index
    %14 = vector.load %arg2[%c0_18, %c0_19, %c18, %c0_20] : memref<1x1x136x4xbf16, #tpu.memory_space<vmem>>, vector<1x1x96x4xbf16>
    %15 = vector.shape_cast %14 : vector<1x1x96x4xbf16> to vector<96x4xbf16>
    %16 = tpu.concatenate %11, %13, %15 in 1 : vector<96x4xbf16>, vector<96x4xbf16>, vector<96x4xbf16> -> vector<96x12xbf16>
    %c1_21 = arith.constant 1 : index
    %c0_22 = arith.constant 0 : index
    %c0_23 = arith.constant 0 : index
    %17 = vector.load %arg4[%c1_21, %c0_22, %c0_23] : memref<3x12x8xbf16, #tpu.memory_space<vmem>>, vector<1x12x8xbf16>
    %18 = vector.shape_cast %17 : vector<1x12x8xbf16> to vector<12x8xbf16>
    %cst_24 = arith.constant dense<0.000000e+00> : vector<96x8xf32>
    %19 = tpu.matmul %16, %18, %cst_24 {dimension_numbers = #tpu.dot_dimension_numbers<[1], [0], [0], [1], [0, 0, 1, 1], [], []>} : vector<96x12xbf16>, vector<12x8xbf16>, vector<96x8xf32> -> vector<96x8xf32>
    %20 = arith.addf %9, %19 : vector<96x8xf32>
    %c0_25 = arith.constant 0 : index
    %c0_26 = arith.constant 0 : index
    %c32 = arith.constant 32 : index
    %c0_27 = arith.constant 0 : index
    %21 = vector.load %arg2[%c0_25, %c0_26, %c32, %c0_27] : memref<1x1x136x4xbf16, #tpu.memory_space<vmem>>, vector<1x1x96x4xbf16>
    %22 = vector.shape_cast %21 : vector<1x1x96x4xbf16> to vector<96x4xbf16>
    %c0_28 = arith.constant 0 : index
    %c0_29 = arith.constant 0 : index
    %c33 = arith.constant 33 : index
    %c0_30 = arith.constant 0 : index
    %23 = vector.load %arg2[%c0_28, %c0_29, %c33, %c0_30] : memref<1x1x136x4xbf16, #tpu.memory_space<vmem>>, vector<1x1x96x4xbf16>
    %24 = vector.shape_cast %23 : vector<1x1x96x4xbf16> to vector<96x4xbf16>
    %c0_31 = arith.constant 0 : index
    %c0_32 = arith.constant 0 : index
    %c34 = arith.constant 34 : index
    %c0_33 = arith.constant 0 : index
    %25 = vector.load %arg2[%c0_31, %c0_32, %c34, %c0_33] : memref<1x1x136x4xbf16, #tpu.memory_space<vmem>>, vector<1x1x96x4xbf16>
    %26 = vector.shape_cast %25 : vector<1x1x96x4xbf16> to vector<96x4xbf16>
    %27 = tpu.concatenate %22, %24, %26 in 1 : vector<96x4xbf16>, vector<96x4xbf16>, vector<96x4xbf16> -> vector<96x12xbf16>
    %c2_34 = arith.constant 2 : index
    %c0_35 = arith.constant 0 : index
    %c0_36 = arith.constant 0 : index
    %28 = vector.load %arg4[%c2_34, %c0_35, %c0_36] : memref<3x12x8xbf16, #tpu.memory_space<vmem>>, vector<1x12x8xbf16>
    %29 = vector.shape_cast %28 : vector<1x12x8xbf16> to vector<12x8xbf16>
    %cst_37 = arith.constant dense<0.000000e+00> : vector<96x8xf32>
    %30 = tpu.matmul %27, %29, %cst_37 {dimension_numbers = #tpu.dot_dimension_numbers<[1], [0], [0], [1], [0, 0, 1, 1], [], []>} : vector<96x12xbf16>, vector<12x8xbf16>, vector<96x8xf32> -> vector<96x8xf32>
    %31 = arith.addf %20, %30 : vector<96x8xf32>
    %c0_38 = arith.constant 0 : index
    %c0_39 = arith.constant 0 : index
    %32 = vector.load %arg5[%c0_38, %c0_39] : memref<1x8xf32, #tpu.memory_space<vmem>>, vector<1x8xf32>
    %33 = vector.broadcast %32 : vector<1x8xf32> to vector<96x8xf32>
    %34 = arith.addf %31, %33 : vector<96x8xf32>
    %cst_40 = arith.constant 0.00999999977 : f32
    %35 = vector.broadcast %cst_40 : f32 to vector<96x8xf32>
    %36 = arith.mulf %35, %34 : vector<96x8xf32>
    %37 = arith.maximumf %34, %36 : vector<96x8xf32>
    %c0_41 = arith.constant 0 : index
    %c0_42 = arith.constant 0 : index
    %c0_43 = arith.constant 0 : index
    %38 = vector.load %arg3[%c0_41, %c0_42, %c0_43] : memref<1x96x1xf32, #tpu.memory_space<vmem>>, vector<1x96x1xf32>
    %39 = vector.shape_cast %38 : vector<1x96x1xf32> to vector<96x1xf32>
    %40 = vector.broadcast %39 : vector<96x1xf32> to vector<96x8xf32>
    %41 = arith.mulf %37, %40 : vector<96x8xf32>
    %cst_44 = arith.constant 0.000000e+00 : bf16
    %42 = vector.broadcast %cst_44 : bf16 to vector<16x8xbf16>
    %c0_45 = arith.constant 0 : index
    %c0_46 = arith.constant 0 : index
    %43 = vector.load %arg9[%c0_45, %c0_46] : memref<120x8xbf16, #tpu.memory_space<vmem>>, vector<16x8xbf16>
    tpu.vector_store %arg9[%c0_45, %c0_46], %42 {strides = array<i32>} : memref<120x8xbf16, #tpu.memory_space<vmem>>, vector<16x8xbf16>,
    %cst_47 = arith.constant 0.000000e+00 : bf16
    %44 = vector.broadcast %cst_47 : bf16 to vector<8x8xbf16>
    %c112 = arith.constant 112 : index
    %c0_48 = arith.constant 0 : index
    %45 = vector.load %arg9[%c112, %c0_48] : memref<120x8xbf16, #tpu.memory_space<vmem>>, vector<8x8xbf16>
    tpu.vector_store %arg9[%c112, %c0_48], %44 {strides = array<i32>} : memref<120x8xbf16, #tpu.memory_space<vmem>>, vector<8x8xbf16>,
    %46 = arith.truncf %41 : vector<96x8xf32> to vector<96x8xbf16>
    %c16_49 = arith.constant 16 : index
    %c0_50 = arith.constant 0 : index
    %47 = vector.load %arg9[%c16_49, %c0_50] : memref<120x8xbf16, #tpu.memory_space<vmem>>, vector<96x8xbf16>
    tpu.vector_store %arg9[%c16_49, %c0_50], %46 {strides = array<i32>} : memref<120x8xbf16, #tpu.memory_space<vmem>>, vector<96x8xbf16>,
    %c15 = arith.constant 15 : index
    %c0_51 = arith.constant 0 : index
    %48 = vector.load %arg9[%c15, %c0_51] : memref<120x8xbf16, #tpu.memory_space<vmem>>, vector<64x8xbf16>
    %c16_52 = arith.constant 16 : index
    %c0_53 = arith.constant 0 : index
    %49 = vector.load %arg9[%c16_52, %c0_53] : memref<120x8xbf16, #tpu.memory_space<vmem>>, vector<64x8xbf16>
    %c17_54 = arith.constant 17 : index
    %c0_55 = arith.constant 0 : index
    %50 = vector.load %arg9[%c17_54, %c0_55] : memref<120x8xbf16, #tpu.memory_space<vmem>>, vector<64x8xbf16>
    %51 = tpu.concatenate %48, %49, %50 in 1 : vector<64x8xbf16>, vector<64x8xbf16>, vector<64x8xbf16> -> vector<64x24xbf16>
    %c0_56 = arith.constant 0 : index
    %c0_57 = arith.constant 0 : index
    %c0_58 = arith.constant 0 : index
    %52 = vector.load %arg6[%c0_56, %c0_57, %c0_58] : memref<3x24x8xbf16, #tpu.memory_space<vmem>>, vector<1x24x8xbf16>
    %53 = vector.shape_cast %52 : vector<1x24x8xbf16> to vector<24x8xbf16>
    %cst_59 = arith.constant dense<0.000000e+00> : vector<64x8xf32>
    %54 = tpu.matmul %51, %53, %cst_59 {dimension_numbers = #tpu.dot_dimension_numbers<[1], [0], [0], [1], [0, 0, 1, 1], [], []>} : vector<64x24xbf16>, vector<24x8xbf16>, vector<64x8xf32> -> vector<64x8xf32>
    %c31 = arith.constant 31 : index
    %c0_60 = arith.constant 0 : index
    %55 = vector.load %arg9[%c31, %c0_60] : memref<120x8xbf16, #tpu.memory_space<vmem>>, vector<64x8xbf16>
    %c32_61 = arith.constant 32 : index
    %c0_62 = arith.constant 0 : index
    %56 = vector.load %arg9[%c32_61, %c0_62] : memref<120x8xbf16, #tpu.memory_space<vmem>>, vector<64x8xbf16>
    %c33_63 = arith.constant 33 : index
    %c0_64 = arith.constant 0 : index
    %57 = vector.load %arg9[%c33_63, %c0_64] : memref<120x8xbf16, #tpu.memory_space<vmem>>, vector<64x8xbf16>
    %58 = tpu.concatenate %55, %56, %57 in 1 : vector<64x8xbf16>, vector<64x8xbf16>, vector<64x8xbf16> -> vector<64x24xbf16>
    %c1_65 = arith.constant 1 : index
    %c0_66 = arith.constant 0 : index
    %c0_67 = arith.constant 0 : index
    %59 = vector.load %arg6[%c1_65, %c0_66, %c0_67] : memref<3x24x8xbf16, #tpu.memory_space<vmem>>, vector<1x24x8xbf16>
    %60 = vector.shape_cast %59 : vector<1x24x8xbf16> to vector<24x8xbf16>
    %cst_68 = arith.constant dense<0.000000e+00> : vector<64x8xf32>
    %61 = tpu.matmul %58, %60, %cst_68 {dimension_numbers = #tpu.dot_dimension_numbers<[1], [0], [0], [1], [0, 0, 1, 1], [], []>} : vector<64x24xbf16>, vector<24x8xbf16>, vector<64x8xf32> -> vector<64x8xf32>
    %62 = arith.addf %54, %61 : vector<64x8xf32>
    %c47 = arith.constant 47 : index
    %c0_69 = arith.constant 0 : index
    %63 = vector.load %arg9[%c47, %c0_69] : memref<120x8xbf16, #tpu.memory_space<vmem>>, vector<64x8xbf16>
    %c48 = arith.constant 48 : index
    %c0_70 = arith.constant 0 : index
    %64 = vector.load %arg9[%c48, %c0_70] : memref<120x8xbf16, #tpu.memory_space<vmem>>, vector<64x8xbf16>
    %c49 = arith.constant 49 : index
    %c0_71 = arith.constant 0 : index
    %65 = vector.load %arg9[%c49, %c0_71] : memref<120x8xbf16, #tpu.memory_space<vmem>>, vector<64x8xbf16>
    %66 = tpu.concatenate %63, %64, %65 in 1 : vector<64x8xbf16>, vector<64x8xbf16>, vector<64x8xbf16> -> vector<64x24xbf16>
    %c2_72 = arith.constant 2 : index
    %c0_73 = arith.constant 0 : index
    %c0_74 = arith.constant 0 : index
    %67 = vector.load %arg6[%c2_72, %c0_73, %c0_74] : memref<3x24x8xbf16, #tpu.memory_space<vmem>>, vector<1x24x8xbf16>
    %68 = vector.shape_cast %67 : vector<1x24x8xbf16> to vector<24x8xbf16>
    %cst_75 = arith.constant dense<0.000000e+00> : vector<64x8xf32>
    %69 = tpu.matmul %66, %68, %cst_75 {dimension_numbers = #tpu.dot_dimension_numbers<[1], [0], [0], [1], [0, 0, 1, 1], [], []>} : vector<64x24xbf16>, vector<24x8xbf16>, vector<64x8xf32> -> vector<64x8xf32>
    %70 = arith.addf %62, %69 : vector<64x8xf32>
    %c0_76 = arith.constant 0 : index
    %c0_77 = arith.constant 0 : index
    %71 = vector.load %arg7[%c0_76, %c0_77] : memref<1x8xf32, #tpu.memory_space<vmem>>, vector<1x8xf32>
    %72 = vector.broadcast %71 : vector<1x8xf32> to vector<64x8xf32>
    %73 = arith.addf %70, %72 : vector<64x8xf32>
    %cst_78 = arith.constant 0.00999999977 : f32
    %74 = vector.broadcast %cst_78 : f32 to vector<64x8xf32>
    %75 = arith.mulf %74, %73 : vector<64x8xf32>
    %76 = arith.maximumf %73, %75 : vector<64x8xf32>
    %77 = tpu.transpose %76, [1, 0] : vector<64x8xf32> -> vector<8x64xf32>
    %78 = arith.truncf %77 : vector<8x64xf32> to vector<8x64xbf16>
    %c0_79 = arith.constant 0 : index
    %c0_80 = arith.constant 0 : index
    %c0_81 = arith.constant 0 : index
    %c0_82 = arith.constant 0 : index
    %79 = vector.load %arg8[%c0_79, %c0_80, %c0_81, %c0_82] : memref<1x1x8x64xbf16, #tpu.memory_space<vmem>>, vector<1x1x8x64xbf16>
    %80 = vector.shape_cast %79 : vector<1x1x8x64xbf16> to vector<8x64xbf16>
    %81 = vector.shape_cast %78 : vector<8x64xbf16> to vector<1x1x8x64xbf16>
    tpu.vector_store %arg8[%c0_79, %c0_80, %c0_81, %c0_82], %81 {strides = array<i32>} : memref<1x1x8x64xbf16, #tpu.memory_space<vmem>>, vector<1x1x8x64xbf16>,
    return
  }
  func.func @transform_0(%arg0: i32, %arg1: i32) -> (i32, i32, i32, i32) {
    %c0_i32 = arith.constant 0 : i32
    %c0_i32_0 = arith.constant 0 : i32
    %c0_i32_1 = arith.constant 0 : i32
    return %arg0, %arg1, %c0_i32, %c0_i32_0 : i32, i32, i32, i32
  }
  func.func @transform_1(%arg0: i32, %arg1: i32) -> (i32, i32, i32) {
    %c0_i32 = arith.constant 0 : i32
    %c0_i32_0 = arith.constant 0 : i32
    %c0_i32_1 = arith.constant 0 : i32
    return %arg1, %c0_i32, %c0_i32_0 : i32, i32, i32
  }
  func.func @transform_2(%arg0: i32, %arg1: i32) -> (i32, i32, i32) {
    %c0_i32 = arith.constant 0 : i32
    %c0_i32_0 = arith.constant 0 : i32
    %c0_i32_1 = arith.constant 0 : i32
    %c0_i32_2 = arith.constant 0 : i32
    return %c0_i32, %c0_i32_0, %c0_i32_1 : i32, i32, i32
  }
  func.func @transform_3(%arg0: i32, %arg1: i32) -> (i32, i32) {
    %c0_i32 = arith.constant 0 : i32
    %c0_i32_0 = arith.constant 0 : i32
    %c0_i32_1 = arith.constant 0 : i32
    return %c0_i32, %c0_i32_0 : i32, i32
  }
  func.func @transform_4(%arg0: i32, %arg1: i32) -> (i32, i32, i32) {
    %c0_i32 = arith.constant 0 : i32
    %c0_i32_0 = arith.constant 0 : i32
    %c0_i32_1 = arith.constant 0 : i32
    %c0_i32_2 = arith.constant 0 : i32
    return %c0_i32, %c0_i32_0, %c0_i32_1 : i32, i32, i32
  }
  func.func @transform_5(%arg0: i32, %arg1: i32) -> (i32, i32) {
    %c0_i32 = arith.constant 0 : i32
    %c0_i32_0 = arith.constant 0 : i32
    %c0_i32_1 = arith.constant 0 : i32
    return %c0_i32, %c0_i32_0 : i32, i32
  }
  func.func @transform_6(%arg0: i32, %arg1: i32) -> (i32, i32, i32, i32) {
    %c0_i32 = arith.constant 0 : i32
    %c0_i32_0 = arith.constant 0 : i32
    %c0_i32_1 = arith.constant 0 : i32
    return %arg0, %arg1, %c0_i32, %c0_i32_0 : i32, i32, i32, i32
  }
}

</mosaic_0001>

<bundles_post_ra>
// kernel: tpu_custom_call.1
= control target key start
LH: loop header
LB: loop body
LE: loop exit
PB: predicated region body
PF: predicated region fallthrough
CT: control target
= control target key end

     0   :  { %11 = vsyncpa [#allocation4], 0  ;;  %s3321_s0 = inlined_call_operand.vmem [shape: bf16[2,2,136,4], index: 0, kind: input, shape index: {}]   ;;  %s3322_s1 = inlined_call_operand.vmem [shape: f32[2,96,1], index: 1, kind: input, shape index: {}]   ;;  %s3323_s2 = inlined_call_operand.vmem [shape: bf16[3,12,8], index: 2, kind: input, shape index: {}]   ;;  %s3324_s3 = inlined_call_operand.vmem [shape: f32[1,8], index: 3, kind: input, shape index: {}]   ;;  %s3325_s4 = inlined_call_operand.vmem [shape: bf16[3,24,8], index: 4, kind: input, shape index: {}]   ;;  %s3326_s5 = inlined_call_operand.vmem [shape: f32[1,8], index: 5, kind: input, shape index: {}]   ;;  %s3327_s6 = inlined_call_operand.hbm [shape: bf16[2,2,8,64], index: 6, kind: output, shape index: {}]  }
   0x1   :  { %13 = vsyncpa [#allocation4 + $0x1], 0  ;;  %s2642_s21 = smov 0   ;;  %s2644_s22 = smov 0  }
   0x2   :  { %s2646_s23 = smov 0   ;;  %s2648_s24 = smov 0  }
   0x3   :  { %s2650_s25 = smov 0   ;;  %s2652_s26 = smov 0  }
   0x4   :  { %s2654_s27 = smov 0   ;;  %s2656_s28 = smov 0  }
   0x5 LB: > { %s2074_s29 = sadd.s32 4294967295, %s2600_s28   ;;  %s2075_s30 = sadd.s32 4294967294, %s2600_s28   ;;  %s2600_s28 = sphi %s2656_s28, %s19_s28   ;;  %s2596_s27 = sphi %s2654_s27, %s3336_s27   ;;  %s2592_s26 = sphi %s2652_s26, %s3335_s26   ;;  %s2588_s25 = sphi %s2650_s25, %s3334_s25   ;;  %s2584_s24 = sphi %s2648_s24, %s3333_s24   ;;  %s2580_s23 = sphi %s2646_s23, %s3332_s23   ;;  %s2576_s22 = sphi %s2644_s22, %s3331_s22   ;;  %s2572_s21 = sphi %s2642_s21, %s3330_s21  }
   0x6   : > { %s28_s7 = sadd.s32 1, %s2592_s26  ;;  %s31_s8 = sadd.s32 1, %s2596_s27 }
   0x7   : > { %p29_p0 = scmp.ge.s32.totalorder %s28_s7, 2  ;;  %p188_p1 = scmp.ne.s32.totalorder %s2580_s23, %s2576_s22 }
   0x8   : > { %p189_p2 = scmp.eq.s32.totalorder %s2074_s29, 3  ;;  %p194_p5 = scmp.ne.s32.totalorder %s2576_s22, %s2572_s21 }
   0x9   : > { %s3338_s7 = smov (%p29_p0, %s28_s7), 0  ;;  %s3340_s8 = smov (!%p29_p0, %s31_s8), %s2596_s27 }
   0xa   : > { %s174_s9 = ssub.s32 %s2592_s26, %s3338_s7  ;;  %p2693_p3 = por %p189_p2, %p188_p1 }
   0xb   : > { %p33_p4 = scmp.ge.s32.totalorder %s3340_s8, 2  ;;  %p195_p6 = scmp.eq.s32.totalorder %s2075_s30, 3 }
   0xc   : > { %p2078_p7 = scmp.ge.s32.totalorder %s2600_s28, 1  ;;  %p245_p9 = scmp.lt.s32.totalorder %s2600_s28, 5 }
   0xd   : > { %s3342_s8 = smov (%p33_p4, %s3340_s8), 0  ;;  %p2702_p8 = por %p195_p6, %p194_p5 }
   0xe   : > { %s173_s12 = ssub.s32 %s2596_s27, %s3342_s8  ;;  %s178_s13 = sadd.s32 1, %s2580_s23 }
   0xf   : > { %s175_s14 = sor.u32 %s174_s9, %s173_s12  ;;  %p246_p10 = pnand %p2078_p7, %p245_p9 }
  0x10   : > { %p176_p11 = scmp.eq.s32.totalorder %s175_s14, 0  ;;  %p284_p12 = scmp.lt.s32.totalorder (!%p246_p10), %s2588_s25, 1  ;;  %v2472_v0 = vld [vmem:[%s3323_s2 + $0x8] sm:$0x3f] (!%p246_p10)   ;;  %vm543_vm0 = vcmask (!%p246_p10), 1045504   ;;  %vm414_vm1 = vcmask (!%p246_p10), 1046528  }
  0x11   : > { %249 = sbr.rel (%p246_p10) target bundleno = 976 (0x3d0), region = 44  ;;  %p286_p13 = scmp.lt.s32.totalorder (!%p246_p10), %s2584_s24, 1  ;;  %2365 = vmatprep.subr.msk.bf16.mxu0 (!%p246_p10), %vm543_vm0, %v2472_v0  ;;  %2366 = vmatprep.subr.msk.bf16.mxu1 (!%p246_p10), %vm543_vm0, %v2472_v0  ;;  %v545_v5 = vsel (!%p246_p10), %vm543_vm0, %v2472_v0, 0  ;;  %vm346_vm2 = vsmask.f32 (!%p246_p10), 7424  ;;  %vm1129_vm3 = vcmask (!%p246_p10), 60416  }
  0x12   : > { %s2711_s15 = scalar_select %p176_p11, %s2580_s23, %s178_s13  }
  0x13   : > { %2246 = vmatpush3.bf16.msra.mxu0 (!%p246_p10), %v545_v5  ;;  %2324 = vmatpush3.bf16.msra.mxu1 (!%p246_p10), %v545_v5  ;;  %vm440_vm4 = vcmask (!%p246_p10), 31744   ;;  %vm453_vm5 = vcmask (!%p246_p10), 64512   ;;  %vm530_vm6 = vcmask (!%p246_p10), 97280   ;;  %vm1279_vm7 = vcmask (!%p246_p10), 1042432   ;;  %s281_s9 = sand.u32 (!%p246_p10), 1, %s2576_s22  }
  0x14   : > { %vm1230_vm8 = vsmask.f32 (!%p246_p10), 3328  ;;  %vm1451_vm9 = vcmask (!%p246_p10), 1043456   ;;  %vm1314_vm10 = vcmask (!%p246_p10), 130048   ;;  %vm1389_vm11 = vsmask.f32 (!%p246_p10), 4352 }
  0x15   : > { %vm1438_vm12 = vcmask (!%p246_p10), 195584   ;;  %vm1963_vm13 = vcmask (!%p246_p10), 519168   ;;  %s1966_s30 = scalar_lea.sflag (!%p246_p10), [#allocation4], %s281_s9 }
  0x18   : > { %s285_s16 = scalar_select %p284_p12, %s2588_s25, 1 }
  0x19   : > { %s2717_s17 = scalar_select %p286_p13, %s2584_s24, 1 }
  0x1a   : > { %s2373_s18 = smul.u32 34, %s285_s16  ;;  %s2602_s16 = smov 8  }
  0x1b   : > { %s2372_s19 = smul.u32 17, %s2717_s17 }
  0x1d   : > { %s290_s20 = sadd.s32 %s2373_s18, %s2372_s19  ;;  %s2603_s18 = smov 4  }
  0x1e   : > { %s2080_s29 = sshll.u32 %s290_s20, 2 }
  0x1f   : > { %s2726_s14 = scalar_lea.vmem %s3321_s0, %s2080_s29  ;;  %s2374_s29 = smul.u32 96, %s2717_s17 }
  0x20   : > { %v302_v1 = vld [vmem:[%s2726_s14 + $0xc] sm:$0xf]  ;;  %v2732_v2 = vld [vmem:[%s2726_s14 + $0x10] sm:$0xff]   ;;  %v471_v3 = vld [vmem:[%s2726_s14 + $0x8] sm:$0xe]  ;;  %s2190_s17 = sshll.u32 %s2588_s25, 1 }
  0x21   : > { %v301_v4 = vld [vmem:[%s2726_s14 + $0x8] sm:$0xf]  ;;  %v2092_v6 = vcombine.low %v471_v3, %v302_v1  ;;  %v2740_v8 = vld [vmem:[%s2726_s14 + $0x18] sm:$0xff]   ;;  %v418_v9 = vrot.slane %v2732_v2, 1  ;;  %v363_v10 = vshll.u32 %v2732_v2, 16  ;;  %v367_v11 = vshrl.u32 %v2732_v2, 16  ;;  %s297_s12 = scalar_lea.vmem %s3322_s1, %s2374_s29 }
  0x22   : > { %v2737_v7 = vcombine.low %v301_v4, %v302_v1  ;;  %v300_v12 = vld [vmem:[%s2726_s14 + $0x4] sm:$0xf]  ;;  %v420_v17 = vrot.slane %v2740_v8, 1  ;;  %v312_v18 = vld [vmem:[%s2726_s14] sm:$0xe]  ;;  %v371_v20 = vshll.u32 %v2740_v8, 16 }
  0x23   : > { %v2747_v13 = vld [vmem:[%s2726_s14 + $0x20] sm:$0xff]   ;;  %v500_v14 = vrot.slane %v2092_v6, 1  ;;  %v365_v19 = vrot.slane %v363_v10, 1  ;;  %v2089_v21 = vcombine.low %v312_v18, %v300_v12  ;;  %v375_v32 = vshrl.u32 %v2740_v8, 16  ;;  %v2766_v34 = vld [vmem:[%s2726_s14 + $0x28] sm:$0xff]   ;;  %v2782_v48 = vld [vmem:[%s2726_s14 + $0x18] sm:$0xff]  }
  0x24   : > { %v355_v15 = vshll.u32 %v2737_v7, 16  ;;  %v359_v16 = vshrl.u32 %v2737_v7, 16  ;;  %v299_v22 = vld [vmem:[%s2726_s14] sm:$0xf]  ;;  %v421_v26 = vsel %vm414_vm1, %v418_v9, %v420_v17  ;;  %v373_v28 = vrot.slane %v371_v20, 1  ;;  %s2605_s29 = smov 16  }
  0x25   : > { %v501_v23 = vsel %vm414_vm1, %v500_v14, %v418_v9  ;;  %v2756_v25 = vcombine.low %v299_v22, %v300_v12  ;;  %v369_v27 = vor.u32 %v367_v11, %v365_v19  ;;  %v416_v29 = vrot.slane %v2737_v7, 1  ;;  %v723_v37 = vld [vmem:[%s2726_s14 + $0x10] sm:$0xf]  ;;  %v724_v38 = vld [vmem:[%s2726_s14 + $0x14] sm:$0xf]  ;;  %v2792_v57 = vld [vmem:[%s2726_s14 + $0x20] sm:$0xff]  }
  0x26   : > { %v357_v24 = vrot.slane %v355_v15, 1  ;;  %506 = vrot.lane.b32.xlu1 %v501_v23, %s2602_s16  ;;  %v415_v31 = vrot.slane %v2089_v21, 1  ;;  %v379_v33 = vshll.u32 %v2747_v13, 16  ;;  %v377_v40 = vor.u32 %v375_v32, %v373_v28  ;;  %v2461_v51 = vld [vmem:[%s2726_s14 + $0x30] ss:$0 sps:$4 sm:$0x11]  }
  0x27   : > { %v350_v35 = vshll.u32 %v2756_v25, 16  ;;  %v374_v39 = vsel %vm346_vm2, %v369_v27, %v373_v28  ;;  %v348_v42 = vshrl.u32 %v2756_v25, 16  ;;  %v383_v45 = vshrl.u32 %v2747_v13, 16  ;;  %v736_v62 = vld [vmem:[%s2726_s14 + $0x10] sm:$0xe] }
  0x28   : > { %v361_v30 = vor.u32 %v359_v16, %v357_v24  ;;  %v381_v41 = vrot.slane %v379_v33, 1  ;;  %v417_v43 = vsel %vm414_vm1, %v415_v31, %v416_v29  ;;  %v387_v46 = vshll.u32 %v2766_v34, 16  ;;  %v2808_v4 = vld [vmem:[%s3323_s2] sm:$0x3f]   ;;  %v2819_v16 = vld [vmem:[%s2726_s14 + $0x28] sm:$0xff]   ;;  %v2837_v32 = vld [vmem:[%s2726_s14 + $0x30] sm:$0xff]  }
  0x29   : > { %v352_v44 = vrot.slane %v350_v35, 1  ;;  %v2779_v47 = vcombine.low %v723_v37, %v724_v38  ;;  %v419_v49 = vsel %vm414_vm1, %v416_v29, %v418_v9  ;;  %v422_v56 = vrot.slane %v2747_v13, 1  ;;  %2367 = vmatprep.subr.msk.bf16.mxu0 %vm543_vm0, %v2808_v4  ;;  %v2840_v33 = vld [vmem:[%s2726_s14 + $0x30] sm:$0xff]  }
  0x2a   : > { %v366_v36 = vsel %vm346_vm2, %v361_v30, %v365_v19  ;;  %432 = vrot.lane.b32.xlu1 %v421_v26, %s2602_s16  ;;  %v382_v50 = vsel %vm346_vm2, %v377_v40, %v381_v41  ;;  %v385_v53 = vor.u32 %v383_v45, %v381_v41  ;;  %v389_v54 = vrot.slane %v387_v46, 1 }
  0x2b   : > { %401 = vrot.lane.b32.xlu0 %v366_v36, %s2603_s18  ;;  %v353_v52 = vor.u32 %v352_v44, %v348_v42  ;;  %v773_v55 = vshll.u32 %v2779_v47, 16  ;;  %v2797_v58 = vrot.slane %v2766_v34, 1  ;;  %v391_v59 = vshrl.u32 %v2766_v34, 16 }
  0x2c   : > { %v395_v60 = vshll.u32 %v2461_v51, 16  ;;  %v778_v61 = vshll.u32 %v2782_v48, 16  ;;  %v390_v0 = vsel %vm346_vm2, %v385_v53, %v389_v54  ;;  %v771_v1 = vshrl.u32 %v2779_v47, 16 }
  0x2d   : > { %v358_v63 = vsel %vm346_vm2, %v353_v52, %v357_v24  ;;  %v775_v3 = vrot.slane %v773_v55, 1  ;;  %v423_v5 = vsel %vm414_vm1, %v420_v17, %v422_v56  ;;  %v393_v6 = vor.u32 %v391_v59, %v389_v54 }
  0x2e   : > { %428 = vrot.lane.b32.xlu1 %v417_v43, %s2602_s16  ;;  %v397_v9 = vrot.slane %v395_v60, 1  ;;  %v2116_v10 = vcombine.low %v736_v62, %v724_v38  ;;  %v425_v11 = vsel %vm414_vm1, %v422_v56, %v2797_v58  ;;  %v780_v14 = vrot.slane %v778_v61, 1  ;;  %v2469_v38 = vld [vmem:[%s2726_s14 + $0x38] ss:$0 sps:$4 sm:$0x11]  }
  0x2f   : > { %403 = vrot.lane.b32.xlu0 %v374_v39, %s2603_s18  ;;  %v776_v12 = vor.u32 %v775_v3, %v771_v1  ;;  %v786_v15 = vshll.u32 %v2792_v57, 16  ;;  %v426_v18 = vrot.slane %v2461_v51, 1  ;;  %v838_v20 = vrot.slane %v2782_v48, 1  ;;  %v2853_v43 = vld [vmem:[%s2726_s14 + $0x38] sm:$0xff]  }
  0x30   : > { %v398_v17 = vsel %vm346_vm2, %v393_v6, %v397_v9  ;;  %v837_v19 = vrot.slane %v2116_v10, 1  ;;  %v782_v21 = vshrl.u32 %v2782_v48, 16  ;;  %v790_v24 = vshrl.u32 %v2792_v57, 16 }
  0x31   : > { %v781_v22 = vsel %vm346_vm2, %v776_v12, %v780_v14  ;;  %v788_v23 = vrot.slane %v786_v15, 1  ;;  %v794_v26 = vshll.u32 %v2819_v16, 16  ;;  %v427_v27 = vsel %vm414_vm1, %v2797_v58, %v426_v18 }
  0x32   : > { %405 = vrot.lane.b32.xlu1 %v382_v50, %s2603_s18  ;;  %v839_v28 = vsel %vm414_vm1, %v837_v19, %v838_v20  ;;  %v784_v29 = vor.u32 %v782_v21, %v780_v14  ;;  %v840_v35 = vrot.slane %v2792_v57, 1  ;;  %v842_v36 = vrot.slane %v2819_v16, 1  ;;  %v2471_v50 = vld [vmem:[%s2726_s14 + $0x40] ss:$0 sps:$4 sm:$0x11]  }
  0x33   : > { %430 = vrot.lane.b32.xlu0 %v419_v49, %s2602_s16  ;;  %v792_v30 = vor.u32 %v790_v24, %v788_v23  ;;  %v796_v31 = vrot.slane %v794_v26, 1  ;;  %v798_v37 = vshrl.u32 %v2819_v16, 16  ;;  %v802_v41 = vshll.u32 %v2837_v32, 16  ;;  %v1049_v24 = vld [vmem:[%s297_s12 + $0x20] sm:$0xff]  ;;  %v1048_v26 = vld [vmem:[%s297_s12 + $0x18] sm:$0xff] }
  0x34   : > { %v789_v39 = vsel %vm346_vm2, %v784_v29, %v788_v23  ;;  %v481_v42 = vshll.u32 %v2840_v33, 16  ;;  %v841_v44 = vsel %vm414_vm1, %v838_v20, %v840_v35  ;;  %v843_v45 = vsel %vm414_vm1, %v840_v35, %v842_v36  ;;  %v1052_v29 = vld [vmem:[%s297_s12 + $0x38] sm:$0xff]  ;;  %v1055_v35 = vld [vmem:[%s297_s12 + $0x50] sm:$0xff] }
  0x35   : > { %v797_v40 = vsel %vm346_vm2, %v792_v30, %v796_v31  ;;  %v800_v46 = vor.u32 %v798_v37, %v796_v31  ;;  %v489_v49 = vshll.u32 %v2469_v38, 16  ;;  %v804_v51 = vrot.slane %v802_v41, 1  ;;  %v1053_v30 = vld [vmem:[%s297_s12 + $0x40] sm:$0xff]  ;;  %v1054_v31 = vld [vmem:[%s297_s12 + $0x48] sm:$0xff] }
  0x36   : > { %407 = vrot.lane.b32.xlu1 %v390_v0, %s2603_s18  ;;  %v483_v52 = vrot.slane %v481_v42, 1  ;;  %v485_v53 = vshrl.u32 %v2840_v33, 16  ;;  %v810_v54 = vshll.u32 %v2853_v43, 16  ;;  %v844_v55 = vrot.slane %v2837_v32, 1  ;;  %v1046_v37 = vld [vmem:[%s297_s12 + $0x8] sm:$0xff] }
  0x37   : > { %399 = vrot.lane.b32.xlu0 %v358_v63, %s2603_s18  ;;  %v491_v56 = vrot.slane %v489_v49, 1  ;;  %v806_v59 = vshrl.u32 %v2837_v32, 16  ;;  %v814_v60 = vshrl.u32 %v2853_v43, 16  ;;  %v818_v61 = vshll.u32 %v2471_v50, 16 }
  0x38   : > { %v805_v62 = vsel %vm346_vm2, %v800_v46, %v804_v51  ;;  %v484_v63 = vsel %vm346_vm2, %v393_v6, %v483_v52  ;;  %v487_v0 = vor.u32 %v485_v53, %v483_v52  ;;  %v812_v1 = vrot.slane %v810_v54, 1 }
  0x39   : > { %v845_v3 = vsel %vm414_vm1, %v842_v36, %v844_v55  ;;  %v808_v9 = vor.u32 %v806_v59, %v804_v51  ;;  %v502_v6 = vrot.slane %v2840_v33, 1  ;;  %v504_v15 = vrot.slane %v2469_v38, 1  ;;  %v1045_v36 = vld [vmem:[%s297_s12] sm:$0xff]  ;;  %v1056_v38 = vld [vmem:[%s297_s12 + $0x58] sm:$0xff]  ;;  %v2474_v51 = vld [vmem:[%s3323_s2 + $0x10] sm:$0x3f]  }
  0x3a   : > { %436 = vrot.lane.b32.xlu1 %v425_v11, %s2602_s16  ;;  %v816_v10 = vor.u32 %v814_v60, %v812_v1  ;;  %v820_v11 = vrot.slane %v818_v61, 1  ;;  %v846_v19 = vrot.slane %v2853_v43, 1  ;;  %v2604_v20 = vmov 0  }
  0x3b   : > { %434 = vrot.lane.b32.xlu0 %v423_v5, %s2602_s16  ;;  %v492_v5 = vsel %vm346_vm2, %v487_v0, %v491_v56  ;;  %v813_v12 = vsel %vm346_vm2, %v808_v9, %v812_v1  ;;  %v503_v18 = vsel %vm414_vm1, %v2797_v58, %v502_v6  ;;  %2451 = vset.pattern.permute.xlu1 %v2604_v20  ;;  %v848_v21 = vrot.slane %v2471_v50, 1 }
  0x3c   : > { %v821_v14 = vsel %vm346_vm2, %v816_v10, %v820_v11  ;;  %1131 = vst.msk [vmem:[#allocation2 + $0x4] sm:$0xf] %vm1129_vm3, %v2604_v20  ;;  %1132 = vst.msk [vmem:[#allocation2 + $0x38] sm:$0xf] %vm1129_vm3, %v2604_v20  ;;  %2452 = vset.pattern.permute.xlu0 %v2604_v20  ;;  %v847_v58 = vsel %vm414_vm1, %v844_v55, %v846_v19  ;;  %v640_v50 = vsel %vm543_vm0, %v2808_v4, 0  ;;  %v907_v0 = vsel %vm543_vm0, %v2474_v51, 0 }
  0x3d   : > { %v849_v23 = vsel %vm414_vm1, %v846_v19, %v848_v21 }
  0x3e   : > { %822 = vrot.lane.b32.xlu1 %v781_v22, %s2603_s18  ;;  %v1047_v22 = vld [vmem:[%s297_s12 + $0x10] sm:$0xff] }
  0x3f   : > { %409 = vrot.lane.b32.xlu0 %v398_v17, %s2603_s18  ;;  %v505_v17 = vsel %vm414_vm1, %v502_v6, %v504_v15 }
  0x42   : > { %850 = vrot.lane.b32.xlu1 %v839_v28, %s2602_s16  ;;  %v1051_v28 = vld [vmem:[%s297_s12 + $0x30] sm:$0xff] }
  0x43   : > { %438 = vrot.lane.b32.xlu0 %v427_v27, %s2602_s16  ;;  %v1050_v27 = vld [vmem:[%s297_s12 + $0x28] sm:$0xff]  ;;  %s2079_s12 = sshll.u32 %s281_s9, 2 }
  0x44   : > { %s283_s14 = scalar_lea.vmem [#allocation3], %s2079_s12 }
  0x46   : > { %826 = vrot.lane.b32.xlu1 %v797_v40, %s2603_s18 }
  0x47   : > { %824 = vrot.lane.b32.xlu0 %v789_v39, %s2603_s18 }
  0x4a   : > { %854 = vrot.lane.b32.xlu1 %v843_v45, %s2602_s16 }
  0x4b   : > { %852 = vrot.lane.b32.xlu0 %v841_v44, %s2602_s16 }
  0x4e   : > { %493 = vrot.lane.b32.xlu1 %v484_v63, %s2603_s18 }
  0x4f   : > { %828 = vrot.lane.b32.xlu0 %v805_v62, %s2603_s18 }
  0x52   : > { %495 = vrot.lane.b32.xlu1 %v492_v5, %s2603_s18 }
  0x53   : > { %856 = vrot.lane.b32.xlu0 %v845_v3, %s2602_s16 }
  0x56   : > { %832 = vrot.lane.b32.xlu1 %v821_v14, %s2603_s18 }
  0x57   : > { %830 = vrot.lane.b32.xlu0 %v813_v12, %s2603_s18  ;;  %s1981_s18 = sshll.u32 %s283_s14, 4  ;;  %s3270_s18 = int_to_ptr.vmem [resolvable:$true] %s1981_s18 }
  0x58   : > { %s2506_s25 = scalar_lea.vmem %s3270_s18, 64 }
  0x59   : > { %p2507_p0 = scmp.ne.s32.totalorder %s3270_s18, %s2506_s25 }
  0x5a   : > { %510 = vrot.lane.b32.xlu1 %v505_v17, %s2602_s16 }
  0x5b   : > { %508 = vrot.lane.b32.xlu0 %v503_v18, %s2602_s16  ;;  %p2508_p1 = pnand %p2507_p0, %p2693_p3 }
  0x5d   : > { %p2509_p2 = pneg %p2508_p1 }
  0x5e   : > { %1069 = vperm.xlu1 %2451, %v1047_v22  }
  0x5f   : > { %858 = vrot.lane.b32.xlu0 %v847_v58, %s2602_s16 }
  0x62   : > { %1079 = vperm.xlu1 %2451, %v1049_v24  }
  0x63   : > { %860 = vrot.lane.b32.xlu0 %v849_v23, %s2602_s16 }
  0x66   : > { %1084 = vperm.xlu1 %2451, %v1050_v27  }
  0x67   : > { %1074 = vperm.xlu0 %2452, %v1048_v26  }
  0x6a   : > { %1094 = vperm.xlu1 %2451, %v1052_v29  }
  0x6b   : > { %1089 = vperm.xlu0 %2452, %v1051_v28  }
  0x6e   : > { %1104 = vperm.xlu1 %2451, %v1054_v31  }
  0x6f   : > { %1099 = vperm.xlu0 %2452, %v1053_v30  }
  0x72   : > { %1059 = vperm.xlu1 %2451, %v1045_v36  }
  0x73   : > { %1109 = vperm.xlu0 %2452, %v1055_v35  }
  0x76   : > { %1114 = vperm.xlu1 %2451, %v1056_v38  }
  0x77   : > { %1064 = vperm.xlu0 %2452, %v1046_v37  }
  0x98   : > { %v507_v39 = vpop.permute.xlu1 %506 }
  0x9c   : > { %v433_v41 = vpop.permute.xlu1 %432 }
  0x9d   : > { %v402_v40 = vpop.permute.xlu0 %401 }
  0x9e   : > { %v444_v42 = vsel %vm440_vm4, %v2737_v7, %v402_v40 }
  0x9f   : > { %v517_v44 = vsel %vm453_vm5, %v444_v42, %v507_v39 }
  0xa0   : > { %2247 = vmatprep.mubr.msk.bf16.mxu0 %vm530_vm6, %v517_v44  ;;  %v429_v46 = vpop.permute.xlu1 %428 }
  0xa1   : > { %v404_v45 = vpop.permute.xlu0 %403 }
  0xa2   : > { %v446_v49 = vsel %vm440_vm4, %v2732_v2, %v404_v45 }
  0xa3   : > { %v459_v52 = vsel %vm453_vm5, %v446_v49, %v433_v41 }
  0xa4   : > { %2248 = vmatmul.mubr.msk.bf16.vlgmr.msra.gmra.mrb[0].mxu0 %vm530_vm6, %v459_v52  ;;  %v406_v53 = vpop.permute.xlu1 %405 }
  0xa5   : > { %2260 = vmatpush3.bf16.msra.mxu0 %v640_v50  ;;  %v431_v7 = vpop.permute.xlu0 %430  ;;  %v448_v4 = vsel %vm440_vm4, %v2740_v8, %v406_v53 }
  0xa6   : > { %2368 = vmatprep.subr.msk.bf16.mxu0 %vm543_vm0, %v2474_v51 }
  0xa8   : > { %v408_v55 = vpop.permute.xlu1 %407 }
  0xa9   : > { %v400_v54 = vpop.permute.xlu0 %399  ;;  %v450_v56 = vsel %vm440_vm4, %v2747_v13, %v408_v55 }
  0xaa   : > { %v442_v2 = vsel %vm440_vm4, %v2756_v25, %v400_v54  ;;  %v457_v25 = vsel %vm453_vm5, %v444_v42, %v431_v7 }
  0xab   : > { %v455_v59 = vsel %vm453_vm5, %v442_v2, %v429_v46 }
  0xac   : > { %2261 = vmatprep.mubr.msk.bf16.mxu0 %vm530_vm6, %v455_v59  ;;  %v437_v61 = vpop.permute.xlu1 %436 }
  0xad   : > { %v435_v60 = vpop.permute.xlu0 %434  ;;  %v463_v62 = vsel %vm453_vm5, %v450_v56, %v437_v61 }
  0xae   : > { %v461_v63 = vsel %vm453_vm5, %v448_v4, %v435_v60 }
  0xaf   : > { %2251 = vmatprep.mubr.msk.bf16.mxu1 %vm530_vm6, %v461_v63 }
  0xb0   : > { %2262 = vmatmul.mubr.msk.bf16.vlgmr.msra.gmra.mrb[0].mxu0 %vm530_vm6, %v457_v25  ;;  %2252 = vmatmul.mubr.msk.bf16.vlgmr.msra.gmra.mrb[0].mxu1 %vm530_vm6, %v463_v62  ;;  %v823_v13 = vpop.permute.xlu1 %822 }
  0xb1   : > { %2274 = vmatpush3.bf16.msra.mxu0 %v907_v0  ;;  %2265 = vmatprep.mubr.msk.bf16.mxu0 %vm530_vm6, %v459_v52  ;;  %v410_v8 = vpop.permute.xlu0 %409  ;;  %v863_v10 = vsel %vm440_vm4, %v2779_v47, %v823_v13 }
  0xb2   : > { %v452_v12 = vsel %vm440_vm4, %v2766_v34, %v410_v8 }
  0xb4   : > { %v851_v3 = vpop.permute.xlu1 %850 }
  0xb5   : > { %v439_v1 = vpop.permute.xlu0 %438  ;;  %v875_v15 = vsel %vm453_vm5, %v863_v10, %v851_v3 }
  0xb6   : > { %v465_v14 = vsel %vm453_vm5, %v452_v12, %v439_v1 }
  0xb8   : > { %2266 = vmatmul.mubr.msk.bf16.gmra.mrb[4].mxu0 %vm530_vm6, %v461_v63  ;;  %v827_v9 = vpop.permute.xlu1 %826 }
  0xb9   : > { %2269 = vmatprep.mubr.msk.bf16.mxu0 %vm530_vm6, %v463_v62  ;;  %v825_v5 = vpop.permute.xlu0 %824  ;;  %v867_v19 = vsel %vm440_vm4, %v2792_v57, %v827_v9 }
  0xba   : > { %v865_v58 = vsel %vm440_vm4, %v2782_v48, %v825_v5 }
  0xbc   : > { %v855_v6 = vpop.permute.xlu1 %854 }
  0xbd   : > { %v853_v11 = vpop.permute.xlu0 %852  ;;  %v879_v22 = vsel %vm453_vm5, %v867_v19, %v855_v6 }
  0xbe   : > { %v877_v21 = vsel %vm453_vm5, %v865_v58, %v853_v11 }
  0xc0   : > { %2270 = vmatmul.mubr.msk.bf16.gmra.mrb[8].mxu0 %vm530_vm6, %v465_v14  ;;  %v494_v17 = vpop.permute.xlu1 %493 }
  0xc1   : > { %2275 = vmatprep.mubr.msk.bf16.mxu0 %vm530_vm6, %v875_v15  ;;  %v829_v18 = vpop.permute.xlu0 %828  ;;  %v513_v57 = vsel %vm440_vm4, %v2766_v34, %v494_v17 }
  0xc2   : > { %v869_v48 = vsel %vm440_vm4, %v2819_v16, %v829_v18 }
  0xc4   : > { %v496_v47 = vpop.permute.xlu1 %495 }
  0xc5   : > { %v857_v20 = vpop.permute.xlu0 %856  ;;  %v515_v26 = vsel %vm440_vm4, %v2840_v33, %v496_v47 }
  0xc6   : > { %v881_v31 = vsel %vm453_vm5, %v869_v48, %v857_v20 }
  0xc8   : > { %2276 = vmatmul.mubr.msk.bf16.vlgmr.msra.gmra.mrb[0].mxu0 %vm530_vm6, %v877_v21  ;;  %v833_v24 = vpop.permute.xlu1 %832 }
  0xc9   : > { %2279 = vmatprep.mubr.msk.bf16.mxu0 %vm530_vm6, %v879_v22  ;;  %v831_v23 = vpop.permute.xlu0 %830  ;;  %v873_v16 = vsel %vm440_vm4, %v2853_v43, %v833_v24  ;;  %v2975_v43 = vld [vmem:[%s3324_s3] ss:$0 sm:$0xff] }
  0xca   : > { %v871_v34 = vsel %vm440_vm4, %v2837_v32, %v831_v23 }
  0xcc   : > { %v511_v28 = vpop.permute.xlu1 %510 }
  0xcd   : > { %v509_v27 = vpop.permute.xlu0 %508  ;;  %v521_v30 = vsel %vm453_vm5, %v515_v26, %v511_v28 }
  0xce   : > { %v519_v29 = vsel %vm453_vm5, %v513_v57, %v509_v27 }
  0xcf   : > { %2255 = vmatprep.mubr.msk.bf16.mxu1 %vm530_vm6, %v519_v29 }
  0xd0   : > { %2256 = vmatmul.mubr.msk.bf16.gmra.mrb[4].mxu1 %vm530_vm6, %v521_v30  ;;  %2280 = vmatmul.mubr.msk.bf16.gmra.mrb[4].mxu0 %vm530_vm6, %v881_v31 }
  0xd1   : > { %v859_v33 = vpop.permute.xlu0 %858 }
  0xd2   : > { %v883_v35 = vsel %vm453_vm5, %v871_v34, %v859_v33 }
  0xd3   : > { %2283 = vmatprep.mubr.msk.bf16.mxu0 %vm530_vm6, %v883_v35 }
  0xd5   : > { %v861_v36 = vpop.permute.xlu0 %860 }
  0xd6   : > { %v885_v37 = vsel %vm453_vm5, %v873_v16, %v861_v36 }
  0xd8   : > { %2284 = vmatmul.mubr.msk.bf16.gmra.mrb[8].mxu0 %vm530_vm6, %v885_v37 }
  0xdd   : > { %v1070_v38 = vpop.permute.xlu1 %1069 }
  0xe1   : > { %v2964_v44 = vpop.permute.xlu1 %1079 }
  0xe5   : > { %v2966_v45 = vpop.permute.xlu1 %1084 }
  0xe6   : > { %v1075_v32 = vpop.permute.xlu0 %1074 }
  0xe9   : > { %v2968_v49 = vpop.permute.xlu1 %1094 }
  0xea   : > { %v1090_v46 = vpop.permute.xlu0 %1089 }
  0xed   : > { %v2977_v51 = vpop.permute.xlu1 %1104 }
  0xee   : > { %v2970_v50 = vpop.permute.xlu0 %1099 }
  0xf1   : > { %v1060_v0 = vpop.permute.xlu1 %1059 }
  0xf2   : > { %v2980_v54 = vpop.permute.xlu0 %1109 }
  0xf6   : > { %v1065_v3 = vpop.permute.xlu0 %1064 }
 0x183   : > { %v2253_v39 = vpop.f32.mrb[0].mxu1 }
 0x184   : > { %v597_v40 = vpop.f32.mrb[1].mxu1 }
 0x185   : > { %v2254_v41 = vpop.f32.mrb[2].mxu1 }
 0x186   : > { %v600_v42 = vpop.f32.mrb[3].mxu1 }
 0x19b   : > { %v2277_v52 = vpop.f32.mrb[0].mxu0 }
 0x19c   : > { %v1011_v7 = vadd.f32 %v2277_v52, %v2975_v43  ;;  %v943_v53 = vpop.f32.mrb[1].mxu0 }
 0x19d   : > { %v1009_v55 = vadd.f32 %v2975_v43, %v943_v53  ;;  %v2278_v2 = vpop.f32.mrb[2].mxu0 }
 0x19e   : > { %v1023_v4 = vmul.f32 0.01, %v1011_v7  ;;  %v1012_v56 = vadd.f32 %v2278_v2, %v2975_v43  ;;  %v946_v59 = vpop.f32.mrb[3].mxu0 }
 0x19f   : > { %v1021_v60 = vmul.f32 0.01, %v1009_v55  ;;  %v1010_v61 = vadd.f32 %v2975_v43, %v946_v59 }
 0x1a0   : > { %v1035_v62 = vmax.f32 %v1011_v7, %v1023_v4  ;;  %v1024_v63 = vmul.f32 0.01, %v1012_v56 }
 0x1a1   : > { %v1022_v25 = vmul.f32 0.01, %v1010_v61  ;;  %v1033_v8 = vmax.f32 %v1009_v55, %v1021_v60 }
 0x1a2   : > { %v1119_v13 = vmul.f32 %v1070_v38, %v1035_v62  ;;  %v1036_v1 = vmax.f32 %v1012_v56, %v1024_v63 }
 0x1a3   : > { %v1117_v5 = vmul.f32 %v1060_v0, %v1033_v8  ;;  %v2257_v9 = vpop.f32.mrb[4].mxu1  ;;  %v2281_v10 = vpop.f32.mrb[4].mxu0  ;;  %v1034_v11 = vmax.f32 %v1010_v61, %v1022_v25 }
 0x1a4   : > { %v2196_v6 = vpack.c.bf16 %v1119_v13, %v1119_v13  ;;  %v1120_v12 = vmul.f32 %v1075_v32, %v1036_v1  ;;  %v2325_v14 = vadd.f32 %v2281_v10, %v2253_v39  ;;  %v613_v15 = vpop.f32.mrb[5].mxu1  ;;  %v959_v18 = vpop.f32.mrb[5].mxu0 }
 0x1a5   : > { %v2194_v17 = vpack.c.bf16 %v1117_v5, %v1117_v5  ;;  %v2326_v19 = vadd.f32 %v959_v18, %v597_v40  ;;  %v1118_v20 = vmul.f32 %v1065_v3, %v1034_v11  ;;  %v2258_v47 = vpop.f32.mrb[6].mxu1  ;;  %v2282_v58 = vpop.f32.mrb[6].mxu0 }
 0x1a6   : > { %1183 = vst.msk [vmem:[#allocation2 + $0x10] sm:$0xf] %vm1129_vm3, %v2196_v6  ;;  %v2197_v21 = vpack.c.bf16 %v1120_v12, %v1120_v12  ;;  %v1015_v22 = vadd.f32 %v2325_v14, %v2975_v43  ;;  %v2327_v23 = vadd.f32 %v2282_v58, %v2254_v41  ;;  %v616_v24 = vpop.f32.mrb[7].mxu1  ;;  %v962_v26 = vpop.f32.mrb[7].mxu0 }
 0x1a7   : > { %1181 = vst.msk [vmem:[#allocation2 + $0x8] sm:$0xf] %vm1129_vm3, %v2194_v17  ;;  %v1013_v57 = vadd.f32 %v2326_v19, %v2975_v43  ;;  %v2195_v27 = vpack.c.bf16 %v1118_v20, %v1118_v20  ;;  %v2328_v28 = vadd.f32 %v962_v26, %v600_v42 }
 0x1a8   : > { %1184 = vst.msk [vmem:[#allocation2 + $0x14] sm:$0xf] %vm1129_vm3, %v2197_v21  ;;  %v1027_v48 = vmul.f32 0.01, %v1015_v22  ;;  %v1016_v29 = vadd.f32 %v2327_v23, %v2975_v43 }
 0x1a9   : > { %v1025_v30 = vmul.f32 0.01, %v1013_v57  ;;  %1182 = vst.msk [vmem:[#allocation2 + $0xc] sm:$0xf] %vm1129_vm3, %v2195_v27  ;;  %v1014_v31 = vadd.f32 %v2328_v28, %v2975_v43 }
 0x1aa   : > { %v1039_v34 = vmax.f32 %v1015_v22, %v1027_v48  ;;  %v1028_v33 = vmul.f32 0.01, %v1016_v29 }
 0x1ab   : > { %v1037_v35 = vmax.f32 %v1013_v57, %v1025_v30  ;;  %v1026_v16 = vmul.f32 0.01, %v1014_v31  ;;  %v2285_v36 = vpop.f32.mrb[8].mxu0 }
 0x1ac   : > { %v1123_v37 = vmul.f32 %v1090_v46, %v1039_v34  ;;  %v1040_v38 = vmax.f32 %v1016_v29, %v1028_v33  ;;  %v2329_v39 = vadd.f32 %v2285_v36, %v2257_v9  ;;  %v975_v40 = vpop.f32.mrb[9].mxu0  ;;  %v2488_v9 = vld [vmem:[%s3325_s4 + $0xc] sm:$0xff]  }
 0x1ad   : > { %v1121_v41 = vmul.f32 %v2964_v44, %v1037_v35  ;;  %v1038_v42 = vmax.f32 %v1014_v31, %v1026_v16  ;;  %v2330_v32 = vadd.f32 %v975_v40, %v613_v15  ;;  %v2286_v52 = vpop.f32.mrb[10].mxu0  ;;  %v2998_v61 = vld [vmem:[#allocation2 + $0x10] sm:$0xf]  ;;  %2287 = vmatprep.subr.bf16.mxu1 %v2488_v9  ;;  %v1115_v15 = vpop.permute.xlu1 %1114 }
 0x1ae   : > { %v2200_v7 = vpack.c.bf16 %v1123_v37, %v1123_v37  ;;  %v1124_v53 = vmul.f32 %v2968_v49, %v1040_v38  ;;  %v1019_v55 = vadd.f32 %v2329_v39, %v2975_v43  ;;  %v2331_v2 = vadd.f32 %v2286_v52, %v2258_v47  ;;  %v978_v4 = vpop.f32.mrb[11].mxu0  ;;  %2288 = vmatpush3.bf16.msra.mxu1 %v2488_v9  ;;  %v3088_v9 = vld [vmem:[%s3325_s4] sm:$0xff]  }
 0x1af   : > { %v2198_v56 = vpack.c.bf16 %v1121_v41, %v1121_v41  ;;  %v1122_v59 = vmul.f32 %v2966_v45, %v1038_v42  ;;  %v1017_v46 = vadd.f32 %v2330_v32, %v2975_v43  ;;  %v2332_v60 = vadd.f32 %v978_v4, %v616_v24  ;;  %v3000_v62 = vld [vmem:[#allocation2 + $0x14] sm:$0xf] }
 0x1b0   : > { %1187 = vst.msk [vmem:[#allocation2 + $0x20] sm:$0xf] %vm1129_vm3, %v2200_v7  ;;  %v2201_v44 = vpack.c.bf16 %v1124_v53, %v1124_v53  ;;  %v1031_v63 = vmul.f32 0.01, %v1019_v55  ;;  %v1020_v49 = vadd.f32 %v2331_v2, %v2975_v43  ;;  %v2145_v0 = vcombine.low %v2998_v61, %v3000_v62  ;;  %v3019_v20 = vld [vmem:[#allocation2 + $0xc] sm:$0xf] }
 0x1b1   : > { %1185 = vst.msk [vmem:[#allocation2 + $0x18] sm:$0xf] %vm1129_vm3, %v2198_v56  ;;  %v2199_v25 = vpack.c.bf16 %v1122_v59, %v1122_v59  ;;  %v1029_v45 = vmul.f32 0.01, %v1017_v46  ;;  %v1018_v8 = vadd.f32 %v2332_v60, %v2975_v43 }
 0x1b2   : > { %1188 = vst.msk [vmem:[#allocation2 + $0x24] sm:$0xf] %vm1129_vm3, %v2201_v44  ;;  %v1043_v13 = vmax.f32 %v1019_v55, %v1031_v63  ;;  %v1032_v1 = vmul.f32 0.01, %v1020_v49  ;;  %v3009_v3 = vrot.slane %v2145_v0, 5  ;;  %v1240_v5 = vshrl.u32 %v2145_v0, 16 }
 0x1b3   : > { %1186 = vst.msk [vmem:[#allocation2 + $0x1c] sm:$0xf] %vm1129_vm3, %v2199_v25  ;;  %v1041_v10 = vmax.f32 %v1017_v46, %v1029_v45  ;;  %v1030_v11 = vmul.f32 0.01, %v1018_v8  ;;  %v1243_v6 = vshll.u32 %v2145_v0, 16 }
 0x1b4   : > { %v1127_v12 = vmul.f32 %v2980_v54, %v1043_v13  ;;  %v1044_v14 = vmax.f32 %v1020_v49, %v1032_v1  ;;  %1364 = vrot.lane.b32.xlu0 %v3009_v3, %s2605_s29  ;;  %v1242_v43 = vrot.slane %v1240_v5, 4  ;;  %v3061_v55 = vld [vmem:[#allocation2 + $0x8] sm:$0xf]  ;;  %v2491_v45 = vld [vmem:[%s3325_s4 + $0x14] ss:$0 sps:$4 sm:$0xff]  }
 0x1b5   : > { %v1125_v18 = vmul.f32 %v2970_v50, %v1041_v10  ;;  %v1042_v17 = vmax.f32 %v1018_v8, %v1030_v11  ;;  %v1245_v19 = vrot.slane %v1243_v6, 5  ;;  %v2140_v50 = vcombine.low %v3019_v20, %v2998_v61  ;;  %2369 = vmatprep.subr.msk.bf16.mxu1 %vm1451_vm9, %v2491_v45 }
 0x1b6   : > { %v2204_v47 = vpack.c.bf16 %v1127_v12, %v1127_v12  ;;  %v1128_v58 = vmul.f32 %v1115_v15, %v1044_v14  ;;  %v2144_v56 = vcombine.low %v3061_v55, %v3019_v20  ;;  %v1453_v15 = vsel %vm1451_vm9, %v2491_v45, 0 }
 0x1b7   : > { %v2202_v21 = vpack.c.bf16 %v1125_v18, %v1125_v18  ;;  %v1126_v54 = vmul.f32 %v2977_v51, %v1042_v17  ;;  %v3022_v22 = vor.u32 %v1245_v19, %v1242_v43  ;;  %v3032_v57 = vld [vmem:[#allocation2 + $0x20] sm:$0xf]  ;;  %2290 = vmatpush3.bf16.msra.mxu1 %v1453_v15 }
 0x1b8   : > { %1191 = vst.msk [vmem:[#allocation2 + $0x30] sm:$0xf] %vm1129_vm3, %v2204_v47  ;;  %v2205_v23 = vpack.c.bf16 %v1128_v58, %v1128_v58  ;;  %v3025_v24 = vld [vmem:[#allocation2 + $0x18] sm:$0xf]  ;;  %v3045_v30 = vld [vmem:[#allocation2 + $0x20] sm:$0xf]  ;;  %2299 = vmatprep.subr.bf16.mxu1 %v3088_v9 }
 0x1b9   : > { %1189 = vst.msk [vmem:[#allocation2 + $0x28] sm:$0xf] %vm1129_vm3, %v2202_v21  ;;  %v2203_v26 = vpack.c.bf16 %v1126_v54, %v1126_v54  ;;  %1351 = vrot.lane.b32.xlu1 %v3022_v22, %s2602_s16  ;;  %v3034_v27 = vld [vmem:[#allocation2 + $0x24] sm:$0xf]  ;;  %v2141_v51 = vcombine.low %v3000_v62, %v3025_v24  ;;  %v1232_v0 = vshrl.u32 %v2144_v56, 16  ;;  %v1235_v25 = vshll.u32 %v2144_v56, 16 }
 0x1ba   : > { %1192 = vst.msk [vmem:[#allocation2 + $0x34] sm:$0xf] %vm1129_vm3, %v2205_v23  ;;  %v3039_v28 = vld [vmem:[#allocation2 + $0x1c] sm:$0xf]  ;;  %v2147_v48 = vcombine.low %v3032_v57, %v3034_v27  ;;  %v3092_v43 = vld [vmem:[#allocation2 + $0x24] sm:$0xf] }
 0x1bb   : > { %v3043_v29 = vld [vmem:[#allocation2 + $0x1c] sm:$0xf]  ;;  %1190 = vst.msk [vmem:[#allocation2 + $0x2c] sm:$0xf] %vm1129_vm3, %v2203_v26  ;;  %v2146_v31 = vcombine.low %v3025_v24, %v3039_v28  ;;  %v2142_v34 = vcombine.low %v3039_v28, %v3032_v57  ;;  %v1234_v12 = vrot.slane %v1232_v0, 4  ;;  %v1237_v14 = vrot.slane %v1235_v25, 5 }
 0x1bc   : > { %v2170_v33 = vcombine.low %v3043_v29, %v3045_v30  ;;  %v1258_v35 = vshrl.u32 %v2147_v48, 16  ;;  %v1261_v16 = vshll.u32 %v2147_v48, 16  ;;  %v3054_v39 = vrot.slane %v2147_v48, 5  ;;  %v3105_v58 = vld [vmem:[#allocation2 + $0x18] sm:$0xf] }
 0x1bd   : > { %v1283_v36 = vrot.slane %v2146_v31, 5  ;;  %v1249_v37 = vshrl.u32 %v2146_v31, 16  ;;  %v1252_v38 = vshll.u32 %v2146_v31, 16  ;;  %v2175_v21 = vcombine.low %v3045_v30, %v3092_v43 }
 0x1be   : > { %v1260_v40 = vrot.slane %v1258_v35, 4  ;;  %v1263_v52 = vrot.slane %v1261_v16, 5  ;;  %v1238_v26 = vor.u32 %v1237_v14, %v1234_v12  ;;  %v2174_v48 = vcombine.low %v3105_v58, %v3043_v29 }
 0x1bf   : > { %v1284_v41 = vsel %vm1279_vm7, %v3009_v3, %v1283_v36  ;;  %v1251_v42 = vrot.slane %v1249_v37, 4  ;;  %v1254_v32 = vrot.slane %v1252_v38, 5  ;;  %v1286_v46 = vsel %vm1279_vm7, %v1283_v36, %v3054_v39  ;;  %v2479_v5 = vld [vmem:[#allocation2 + $0x30] ss:$0 sps:$4 sm:$0x11]  }
 0x1c0   : > { %1293 = vrot.lane.b32.xlu1 %v1284_v41, %s2605_s29  ;;  %v3059_v7 = vld [vmem:[#allocation2 + $0x28] sm:$0xf]  ;;  %v3073_v60 = vor.u32 %v1263_v52, %v1260_v40  ;;  %v1362_v19 = vrot.slane %v2479_v5, 5  ;;  %v3109_v54 = vld [vmem:[#allocation2 + $0x30] sm:$0xf]  ;;  %v1280_v16 = vrot.slane %v2144_v56, 5  ;;  %v1247_v37 = vsel %vm1230_vm8, %v1238_v26, %v3022_v22 }
 0x1c1   : > { %v1255_v53 = vor.u32 %v1254_v32, %v1251_v42  ;;  %v2150_v2 = vcombine.low %v3034_v27, %v3059_v7  ;;  %v3090_v11 = vld [vmem:[#allocation2 + $0x28] sm:$0xf]  ;;  %v1676_v36 = vshrl.u32 %v2175_v21, 16  ;;  %v1668_v40 = vshrl.u32 %v2174_v48, 16 }
 0x1c2   : > { %v3065_v4 = vld [vmem:[#allocation2 + $0x2c] sm:$0xf]  ;;  %v2171_v47 = vcombine.low %v3092_v43, %v3090_v11  ;;  %v2481_v38 = vld [vmem:[#allocation2 + $0x28] ss:$0 sps:$4 sm:$0x11]   ;;  %v1671_v41 = vshll.u32 %v2174_v48, 16  ;;  %v1282_v32 = vsel %vm1279_vm7, %v1280_v16, %v3009_v3 }
 0x1c3   : > { %v1256_v59 = vsel %vm1230_vm8, %v3022_v22, %v1255_v53  ;;  %v2152_v44 = vcombine.low %v3059_v7, %v3065_v4  ;;  %v1265_v8 = vsel %vm1230_vm8, %v1255_v53, %v3073_v60  ;;  %v3099_v17 = vld [vmem:[#allocation2 + $0x2c] sm:$0xf]  ;;  %v1679_v42 = vshll.u32 %v2175_v21, 16 }
 0x1c4   : > { %1270 = vrot.lane.b32.xlu0 %v1256_v59, %s2602_s16  ;;  %1295 = vrot.lane.b32.xlu1 %v1286_v46, %s2605_s29  ;;  %v2172_v31 = vcombine.low %v3099_v17, %v3109_v54  ;;  %v1678_v52 = vrot.slane %v1676_v36, 4  ;;  %v1287_v53 = vrot.slane %v2481_v38, 5  ;;  %v1670_v59 = vrot.slane %v1668_v40, 4  ;;  %v1328_v38 = vld [vmem:[#allocation2 + $0xc] sm:$0x8] }
 0x1c5   : > { %v1343_v63 = vshrl.u32 %v2152_v44, 16  ;;  %v1346_v49 = vshll.u32 %v2152_v44, 16  ;;  %v1360_v6 = vrot.slane %v2152_v44, 5  ;;  %v1673_v46 = vrot.slane %v1671_v41, 5  ;;  %v3130_v44 = vld [vmem:[#allocation2 + $0x34] sm:$0xf] }
 0x1c6   : > { %v1681_v56 = vrot.slane %v1679_v42, 5  ;;  %v2176_v22 = vcombine.low %v3090_v11, %v3099_v17  ;;  %v2177_v45 = vcombine.low %v3109_v54, %v3130_v44  ;;  %v2149_v41 = vcombine.low %v1328_v38, %v2998_v61 }
 0x1c7   : > { %v1345_v13 = vrot.slane %v1343_v63, 4  ;;  %v1348_v1 = vrot.slane %v1346_v49, 5  ;;  %v1363_v23 = vsel %vm1279_vm7, %v1360_v6, %v1362_v19  ;;  %v1361_v35 = vsel %vm1279_vm7, %v3054_v39, %v1360_v6 }
 0x1c8   : > { %1272 = vrot.lane.b32.xlu0 %v1265_v8, %s2602_s16  ;;  %v1288_v63 = vsel %vm1279_vm7, %v3054_v39, %v1287_v53  ;;  %v1674_v49 = vor.u32 %v1673_v46, %v1670_v59  ;;  %v1682_v0 = vor.u32 %v1681_v56, %v1678_v52  ;;  %v1685_v3 = vshrl.u32 %v2176_v22, 16 }
 0x1c9   : > { %v1349_v10 = vor.u32 %v1348_v1, %v1345_v13  ;;  %v1688_v25 = vshll.u32 %v2176_v22, 16  ;;  %v1715_v13 = vrot.slane %v2174_v48, 5  ;;  %v1716_v1 = vrot.slane %v2175_v21, 5  ;;  %v2486_v21 = vld [vmem:[#allocation2 + $0x38] ss:$0 sps:$4 sm:$0x11]  }
 0x1ca   : > { %v1683_v8 = vsel %vm1230_vm8, %v1674_v49, %v1682_v0  ;;  %v1687_v5 = vrot.slane %v1685_v3, 4  ;;  %v1697_v6 = vshll.u32 %v2177_v45, 16  ;;  %v1718_v12 = vrot.slane %v2176_v22, 5 }
 0x1cb   : > { %1355 = vrot.lane.b32.xlu1 %v1349_v10, %s2602_s16  ;;  %v1350_v18 = vsel %vm1230_vm8, %v3073_v60, %v1349_v10  ;;  %v1690_v39 = vrot.slane %v1688_v25, 5  ;;  %v1694_v10 = vshrl.u32 %v2177_v45, 16  ;;  %v1717_v14 = vsel %vm1279_vm7, %v1715_v13, %v1716_v1 }
 0x1cc   : > { %1353 = vrot.lane.b32.xlu0 %v1350_v18, %s2602_s16  ;;  %v1719_v19 = vsel %vm1279_vm7, %v1716_v1, %v1718_v12  ;;  %v1720_v48 = vrot.slane %v2177_v45, 5 }
 0x1cd   : > { %v1691_v15 = vor.u32 %v1690_v39, %v1687_v5  ;;  %v1696_v18 = vrot.slane %v1694_v10, 4 }
 0x1cf   : > { %1368 = vrot.lane.b32.xlu1 %v1363_v23, %s2605_s29  ;;  %v1692_v23 = vsel %vm1230_vm8, %v1682_v0, %v1691_v15 }
 0x1d0   : > { %1366 = vrot.lane.b32.xlu0 %v1361_v35, %s2605_s29  ;;  %v1722_v35 = vrot.slane %v2486_v21, 5 }
 0x1d2   : > { %v1723_v36 = vsel %vm1279_vm7, %v1720_v48, %v1722_v35 }
 0x1d3   : > { %1268 = vrot.lane.b32.xlu1 %v1247_v37, %s2602_s16  ;;  %v1721_v37 = vsel %vm1279_vm7, %v1718_v12, %v1720_v48 }
 0x1d4   : > { %1266 = vrot.lane.b32.xlu0 %v1238_v26, %s2602_s16 }
 0x1d7   : > { %1291 = vrot.lane.b32.xlu1 %v1282_v32, %s2605_s29 }
 0x1d8   : > { %1289 = vrot.lane.b32.xlu0 %v1280_v16, %s2605_s29 }
 0x1db   : > { %1297 = vrot.lane.b32.xlu1 %v1288_v63, %s2605_s29 }
 0x1dc   : > { %1274 = vrot.lane.b32.xlu0 %v3073_v60, %s2602_s16  ;;  %v1699_v60 = vrot.slane %v1697_v6, 5 }
 0x1de   : > { %v1700_v26 = vor.u32 %v1699_v60, %v1696_v18  ;;  %v2151_v18 = vcombine.low %v3065_v4, %v3065_v4  ;;  %v2497_v4 = vld [vmem:[%s3325_s4 + $0x8] ss:$0 sps:$4 sm:$0xff]  }
 0x1df   : > { %1704 = vrot.lane.b32.xlu1 %v1683_v8, %s2602_s16 }
 0x1e0   : > { %1702 = vrot.lane.b32.xlu0 %v1674_v49, %s2602_s16  ;;  %v1701_v16 = vsel %vm1230_vm8, %v1691_v15, %v1700_v26 }
 0x1e3   : > { %1724 = vrot.lane.b32.xlu1 %v1715_v13, %s2605_s29 }
 0x1e4   : > { %1726 = vrot.lane.b32.xlu0 %v1717_v14, %s2605_s29 }
 0x1e7   : > { %1728 = vrot.lane.b32.xlu1 %v1719_v19, %s2605_s29 }
 0x1e8   : > { %1706 = vrot.lane.b32.xlu0 %v1692_v23, %s2602_s16 }
 0x1eb   : > { %1710 = vrot.lane.b32.xlu1 %v1700_v26, %s2602_s16 }
 0x1ec   : > { %1708 = vrot.lane.b32.xlu0 %v1701_v16, %s2602_s16  ;;  %s1977_s16 = sadd.s32 %s2584_s24, %s2190_s17  ;;  %s2606_s24 = smov [#allocation3]  }
 0x1ed   : > { %s2191_s13 = sshll.u32 %s1977_s16, 6  ;;  %s2510_s12 = sshll.u32 %s2606_s24, 4  ;;  %s2511_s12 = int_to_ptr.vmem [resolvable:$false] %s2510_s12 }
 0x1ee   : > { %s2512_s17 = scalar_lea.vmem %s2511_s12, 128  ;;  %p2513_p4 = scmp.lt.s32.totalorder %s3270_s18, %s2511_s12 }
 0x1ef   : > { %1732 = vrot.lane.b32.xlu1 %v1723_v36, %s2605_s29  ;;  %p2514_p5 = scmp.lt.s32.totalorder %s2512_s17, %s2506_s25 }
 0x1f0   : > { %1730 = vrot.lane.b32.xlu0 %v1721_v37, %s2605_s29  ;;  %s3268_s29 = scalar_lea.hbm %s3327_s6, %s2191_s13 }
 0x1f1   : > { %p2515_p6 = por %p2514_p5, %p2513_p4 }
 0x1f3   : > { %p2516_p7 = pnand %p2515_p6, %p2509_p2 }
 0x226   : > { %v1365_v32 = vpop.permute.xlu0 %1364 }
 0x22b   : > { %v1352_v40 = vpop.permute.xlu1 %1351 }
 0x22c   : > { %v1372_v42 = vsel %vm453_vm5, %v2149_v41, %v1352_v40  ;;  %v1193_v40 = vld [vmem:[#allocation2 + $0x4] sm:$0x8] }
 0x22d   : > { %v1380_v52 = vsel %vm1314_vm10, %v1372_v42, %v1365_v32 }
 0x22e   : > { %v1390_v59 = vshrl.u32 %v1380_v52, 16  ;;  %v1393_v46 = vshll.u32 %v1380_v52, 16  ;;  %v1563_v52 = vsel %vm1451_vm9, %v2497_v4, 0 }
 0x230   : > { %v1392_v49 = vrot.slane %v1390_v59, 3  ;;  %v1395_v0 = vrot.slane %v1393_v46, 4 }
 0x232   : > { %v1294_v53 = vpop.permute.xlu1 %1293  ;;  %v1396_v62 = vor.u32 %v1395_v0, %v1392_v49 }
 0x236   : > { %v1271_v56 = vpop.permute.xlu0 %1270  ;;  %v1296_v3 = vpop.permute.xlu1 %1295 }
 0x237   : > { %v1307_v22 = vsel %vm453_vm5, %v2141_v51, %v1271_v56  ;;  %v2139_v56 = vcombine.low %v1193_v40, %v3061_v55 }
 0x238   : > { %v1320_v63 = vsel %vm1314_vm10, %v1307_v22, %v1294_v53  ;;  %v2501_v53 = vld [vmem:[%s3325_s4 + $0x18] sm:$0xff]  }
 0x239   : > { %v1397_v25 = vshrl.u32 %v1320_v63, 16  ;;  %v1400_v45 = vshll.u32 %v1320_v63, 16 }
 0x23a   : > { %v1273_v8 = vpop.permute.xlu0 %1272 }
 0x23b   : > { %v1399_v13 = vrot.slane %v1397_v25, 3  ;;  %v1402_v1 = vrot.slane %v1400_v45, 4  ;;  %v1310_v5 = vsel %vm453_vm5, %v2142_v34, %v1273_v8 }
 0x23c   : > { %v1322_v39 = vsel %vm1314_vm10, %v1310_v5, %v1296_v3  ;;  %v2143_v5 = vcombine.low %v3034_v27, %v3034_v27  ;;  %v2503_v27 = vld [vmem:[%s3325_s4 + $0x20] ss:$0 sps:$4 sm:$0xff]  }
 0x23d   : > { %v3169_v24 = vor.u32 %v1402_v1, %v1399_v13  ;;  %v1405_v51 = vshrl.u32 %v1322_v39, 16  ;;  %v1408_v10 = vshll.u32 %v1322_v39, 16  ;;  %v1356_v6 = vpop.permute.xlu1 %1355 }
 0x23e   : > { %v1354_v12 = vpop.permute.xlu0 %1353  ;;  %v1378_v34 = vsel %vm453_vm5, %v2151_v18, %v1356_v6 }
 0x23f   : > { %v1407_v14 = vrot.slane %v1405_v51, 3  ;;  %v1410_v15 = vrot.slane %v1408_v10, 4  ;;  %v1404_v57 = vsel %vm1389_vm11, %v1396_v62, %v3169_v24  ;;  %v1375_v19 = vsel %vm453_vm5, %v2150_v2, %v1354_v12 }
 0x240   : > { %2291 = vmatprep.mubr.msk.bf16.mxu1 %vm1438_vm12, %v1404_v57 }
 0x241   : > { %v3176_v28 = vor.u32 %v1410_v15, %v1407_v14  ;;  %v1369_v60 = vpop.permute.xlu1 %1368 }
 0x242   : > { %v1384_v21 = vsel %vm1314_vm10, %v1378_v34, %v1369_v60  ;;  %v1367_v23 = vpop.permute.xlu0 %1366  ;;  %v1630_v60 = vld [vmem:[#allocation2 + $0x14] sm:$0x8] }
 0x243   : > { %v1421_v26 = vshrl.u32 %v1384_v21, 16  ;;  %v1424_v48 = vshll.u32 %v1384_v21, 16  ;;  %v1382_v35 = vsel %vm1314_vm10, %v1375_v19, %v1367_v23  ;;  %v1412_v16 = vsel %vm1389_vm11, %v3169_v24, %v3176_v28 }
 0x244   : > { %v1413_v36 = vshrl.u32 %v1382_v35, 16  ;;  %v1416_v37 = vshll.u32 %v1382_v35, 16  ;;  %2292 = vmatmul.mubr.msk.bf16.vlgmr.msra.gmra.mrb[8].mxu1 %vm1438_vm12, %v1412_v16 }
 0x245   : > { %v1423_v7 = vrot.slane %v1421_v26, 3  ;;  %v1426_v2 = vrot.slane %v1424_v48, 4  ;;  %2300 = vmatpush3.bf16.msra.mxu1 %v3088_v9  ;;  %v1269_v38 = vpop.permute.xlu1 %1268  ;;  %v2169_v26 = vcombine.low %v1630_v60, %v3105_v58  ;;  %v1824_v58 = vsel %vm1451_vm9, %v2503_v27, 0 }
 0x246   : > { %v1415_v41 = vrot.slane %v1413_v36, 3  ;;  %v1418_v42 = vrot.slane %v1416_v37, 4  ;;  %v1267_v32 = vpop.permute.xlu0 %1266  ;;  %2370 = vmatprep.subr.msk.bf16.mxu1 %vm1451_vm9, %v2497_v4  ;;  %v1304_v9 = vsel %vm453_vm5, %v2140_v50, %v1269_v38 }
 0x247   : > { %v1427_v59 = vor.u32 %v1426_v2, %v1423_v7  ;;  %v1301_v63 = vsel %vm453_vm5, %v2139_v56, %v1267_v32 }
 0x248   : > { %v1419_v46 = vor.u32 %v1418_v42, %v1415_v41 }
 0x249   : > { %v1292_v22 = vpop.permute.xlu1 %1291  ;;  %2302 = vmatpush3.bf16.msra.mxu1 %v1563_v52 }
 0x24a   : > { %v1318_v49 = vsel %vm1314_vm10, %v1304_v9, %v1292_v22  ;;  %v1290_v0 = vpop.permute.xlu0 %1289  ;;  %v1420_v3 = vsel %vm1389_vm11, %v3176_v28, %v1419_v46  ;;  %v1428_v25 = vsel %vm1389_vm11, %v1419_v46, %v1427_v59  ;;  %2311 = vmatprep.subr.bf16.mxu1 %v2501_v53 }
 0x24b   : > { %v1527_v45 = vshrl.u32 %v1318_v49, 16  ;;  %v1530_v55 = vshll.u32 %v1318_v49, 16  ;;  %v1316_v8 = vsel %vm1314_vm10, %v1301_v63, %v1290_v0  ;;  %2295 = vmatprep.mubr.msk.bf16.mxu1 %vm1438_vm12, %v1420_v3 }
 0x24c   : > { %v1520_v61 = vshrl.u32 %v1316_v8, 16  ;;  %v1523_v20 = vshll.u32 %v1316_v8, 16  ;;  %2296 = vmatmul.mubr.msk.bf16.gmra.mrb[12].mxu1 %vm1438_vm12, %v1428_v25 }
 0x24d   : > { %v1529_v50 = vrot.slane %v1527_v45, 3  ;;  %v1532_v13 = vrot.slane %v1530_v55, 4  ;;  %v1298_v1 = vpop.permute.xlu1 %1297  ;;  %v2173_v45 = vcombine.low %v3130_v44, %v3130_v44 }
 0x24e   : > { %v1522_v39 = vrot.slane %v1520_v61, 3  ;;  %v1525_v62 = vrot.slane %v1523_v20, 4  ;;  %v1275_v51 = vpop.permute.xlu0 %1274 }
 0x24f   : > { %v1533_v10 = vor.u32 %v1532_v13, %v1529_v50  ;;  %v1313_v6 = vsel %vm453_vm5, %v2143_v5, %v1275_v51 }
 0x250   : > { %v1526_v12 = vor.u32 %v1525_v62, %v1522_v39  ;;  %v1324_v14 = vsel %vm1314_vm10, %v1313_v6, %v1298_v1 }
 0x251   : > { %v1536_v15 = vshrl.u32 %v1324_v14, 16  ;;  %v1539_v18 = vshll.u32 %v1324_v14, 16  ;;  %v1705_v57 = vpop.permute.xlu1 %1704  ;;  %v1535_v34 = vsel %vm1389_vm11, %v1533_v10, %v3169_v24 }
 0x252   : > { %v1703_v19 = vpop.permute.xlu0 %1702  ;;  %v1534_v21 = vsel %vm1389_vm11, %v1526_v12, %v1533_v10  ;;  %v1739_v36 = vsel %vm453_vm5, %v2170_v33, %v1705_v57  ;;  %v2188_v12 = vld [vmem:[%s3326_s5] ss:$0 sm:$0xff] }
 0x253   : > { %v1538_v23 = vrot.slane %v1536_v15, 3  ;;  %v1541_v4 = vrot.slane %v1539_v18, 4  ;;  %2303 = vmatprep.mubr.msk.bf16.mxu1 %vm1438_vm12, %v1534_v21  ;;  %v1736_v35 = vsel %vm453_vm5, %v2169_v26, %v1703_v19 }
 0x254   : > { %2304 = vmatmul.mubr.msk.bf16.vlgmr.msra.gmra.mrb[8].mxu1 %vm1438_vm12, %v1535_v34 }
 0x255   : > { %v1542_v48 = vor.u32 %v1541_v4, %v1538_v23  ;;  %2312 = vmatpush3.bf16.msra.mxu1 %v2501_v53  ;;  %v1725_v24 = vpop.permute.xlu1 %1724  ;;  %2307 = vmatprep.mubr.msk.bf16.mxu1 %vm1438_vm12, %v1412_v16 }
 0x256   : > { %v1750_v37 = vsel %vm1314_vm10, %v1736_v35, %v1725_v24  ;;  %v1727_v7 = vpop.permute.xlu0 %1726  ;;  %2371 = vmatprep.subr.msk.bf16.mxu1 %vm1451_vm9, %v2503_v27 }
 0x257   : > { %v1763_v2 = vshrl.u32 %v1750_v37, 16  ;;  %v1766_v38 = vshll.u32 %v1750_v37, 16  ;;  %v1752_v40 = vsel %vm1314_vm10, %v1739_v36, %v1727_v7  ;;  %v1543_v41 = vsel %vm1389_vm11, %v3176_v28, %v1542_v48 }
 0x258   : > { %v1770_v16 = vshrl.u32 %v1752_v40, 16  ;;  %v1773_v42 = vshll.u32 %v1752_v40, 16 }
 0x259   : > { %v1765_v32 = vrot.slane %v1763_v2, 3  ;;  %v1768_v29 = vrot.slane %v1766_v38, 4  ;;  %v1729_v30 = vpop.permute.xlu1 %1728  ;;  %2314 = vmatpush3.bf16.msra.mxu1 %v1824_v58 }
 0x25a   : > { %v1772_v33 = vrot.slane %v1770_v16, 3  ;;  %v1775_v52 = vrot.slane %v1773_v42, 4  ;;  %v1707_v53 = vpop.permute.xlu0 %1706 }
 0x25b   : > { %v1769_v59 = vor.u32 %v1768_v29, %v1765_v32  ;;  %v1742_v46 = vsel %vm453_vm5, %v2171_v47, %v1707_v53 }
 0x25c   : > { %v1776_v56 = vor.u32 %v1775_v52, %v1772_v33  ;;  %v1754_v9 = vsel %vm1314_vm10, %v1742_v46, %v1729_v30  ;;  %2308 = vmatmul.mubr.msk.bf16.gmra.mrb[12].mxu1 %vm1438_vm12, %v1543_v41 }
 0x25d   : > { %v1778_v28 = vshrl.u32 %v1754_v9, 16  ;;  %v1781_v22 = vshll.u32 %v1754_v9, 16  ;;  %v1711_v63 = vpop.permute.xlu1 %1710 }
 0x25e   : > { %v1709_v49 = vpop.permute.xlu0 %1708  ;;  %v1777_v0 = vsel %vm1389_vm11, %v1769_v59, %v1776_v56  ;;  %v1748_v43 = vsel %vm453_vm5, %v2173_v45, %v1711_v63 }
 0x25f   : > { %v1780_v3 = vrot.slane %v1778_v28, 3  ;;  %v1783_v25 = vrot.slane %v1781_v22, 4  ;;  %2315 = vmatprep.mubr.msk.bf16.mxu1 %vm1438_vm12, %v1777_v0  ;;  %v1745_v55 = vsel %vm453_vm5, %v2172_v31, %v1709_v49 }
 0x261   : > { %v1784_v11 = vor.u32 %v1783_v25, %v1780_v3  ;;  %v1733_v47 = vpop.permute.xlu1 %1732 }
 0x262   : > { %v1758_v8 = vsel %vm1314_vm10, %v1748_v43, %v1733_v47  ;;  %v1731_v61 = vpop.permute.xlu0 %1730 }
 0x263   : > { %v1794_v20 = vshrl.u32 %v1758_v8, 16  ;;  %v1797_v50 = vshll.u32 %v1758_v8, 16  ;;  %v1756_v13 = vsel %vm1314_vm10, %v1745_v55, %v1731_v61  ;;  %v1785_v44 = vsel %vm1389_vm11, %v1776_v56, %v1784_v11 }
 0x264   : > { %v1786_v1 = vshrl.u32 %v1756_v13, 16  ;;  %v1789_v5 = vshll.u32 %v1756_v13, 16  ;;  %2316 = vmatmul.mubr.msk.bf16.vlgmr.msra.gmra.mrb[8].mxu1 %vm1438_vm12, %v1785_v44 }
 0x265   : > { %v1796_v39 = vrot.slane %v1794_v20, 3  ;;  %v1799_v62 = vrot.slane %v1797_v50, 4 }
 0x266   : > { %v1788_v51 = vrot.slane %v1786_v1, 3  ;;  %v1791_v10 = vrot.slane %v1789_v5, 4 }
 0x267   : > { %v1800_v17 = vor.u32 %v1799_v62, %v1796_v39 }
 0x268   : > { %v1792_v54 = vor.u32 %v1791_v10, %v1788_v51 }
 0x26a   : > { %v1793_v31 = vsel %vm1389_vm11, %v1784_v11, %v1792_v54  ;;  %v1801_v6 = vsel %vm1389_vm11, %v1792_v54, %v1800_v17 }
 0x26b   : > { %2319 = vmatprep.mubr.msk.bf16.mxu1 %vm1438_vm12, %v1793_v31 }
 0x26c   : > { %2320 = vmatmul.mubr.msk.bf16.gmra.mrb[12].mxu1 %vm1438_vm12, %v1801_v6 }
 0x337   : > { %v2317_v14 = vpop.f32.mrb[8].mxu1 }
 0x338   : > { %v1860_v15 = vpop.f32.mrb[9].mxu1  ;;  %v1908_v21 = vadd.f32 %v2317_v14, %v2188_v12 }
 0x339   : > { %v1906_v18 = vadd.f32 %v2188_v12, %v1860_v15  ;;  %v2318_v57 = vpop.f32.mrb[10].mxu1 }
 0x33a   : > { %v1863_v34 = vpop.f32.mrb[11].mxu1  ;;  %v1916_v48 = vmul.f32 0.01, %v1908_v21  ;;  %v1909_v35 = vadd.f32 %v2318_v57, %v2188_v12 }
 0x33b   : > { %v1914_v60 = vmul.f32 0.01, %v1906_v18  ;;  %v1907_v19 = vadd.f32 %v2188_v12, %v1863_v34 }
 0x33c   : > { %v1924_v7 = vmax.f32 %v1908_v21, %v1916_v48  ;;  %v1917_v58 = vmul.f32 0.01, %v1909_v35 }
 0x33d   : > { %v1922_v27 = vmax.f32 %v1906_v18, %v1914_v60  ;;  %v1915_v23 = vmul.f32 0.01, %v1907_v19 }
 0x33e   : > { %v1925_v38 = vmax.f32 %v1909_v35, %v1917_v58 }
 0x33f   : > { %1930 = vxpose.xlu0.b32.start [1/8] (short) (narrow) %v1922_v27, 8  ;;  %v2321_v4 = vpop.f32.mrb[12].mxu1  ;;  %v1923_v24 = vmax.f32 %v1907_v19, %v1915_v23 }
 0x340   : > { %v1876_v26 = vpop.f32.mrb[13].mxu1  ;;  %v1912_v16 = vadd.f32 %v2321_v4, %v2188_v12 }
 0x341   : > { %v2322_v36 = vpop.f32.mrb[14].mxu1  ;;  %v1910_v2 = vadd.f32 %v2188_v12, %v1876_v26 }
 0x342   : > { %v1879_v37 = vpop.f32.mrb[15].mxu1  ;;  %v1920_v29 = vmul.f32 0.01, %v1912_v16  ;;  %v1913_v30 = vadd.f32 %v2322_v36, %v2188_v12 }
 0x343   : > { %1931 = vxpose.xlu0.b32.cont [2/8] (short) (narrow) %v1923_v24, 8  ;;  %v1918_v40 = vmul.f32 0.01, %v1910_v2  ;;  %v1911_v41 = vadd.f32 %v2188_v12, %v1879_v37 }
 0x344   : > { %v1928_v52 = vmax.f32 %v1912_v16, %v1920_v29  ;;  %v1921_v53 = vmul.f32 0.01, %v1913_v30 }
 0x345   : > { %v1926_v42 = vmax.f32 %v1910_v2, %v1918_v40  ;;  %v1919_v32 = vmul.f32 0.01, %v1911_v41 }
 0x346   : > { %v1929_v59 = vmax.f32 %v1913_v30, %v1921_v53 }
 0x347   : > { %1932 = vxpose.xlu0.b32.cont [3/8] (short) (narrow) %v1924_v7, 8  ;;  %v1927_v33 = vmax.f32 %v1911_v41, %v1919_v32 }
 0x34b   : > { %1933 = vxpose.xlu0.b32.cont [4/8] (short) (narrow) %v1925_v38, 8 }
 0x34f   : > { %1934 = vxpose.xlu0.b32.cont [5/8] (short) (narrow) %v1926_v42, 8 }
 0x353   : > { %1935 = vxpose.xlu0.b32.cont [6/8] (short) (narrow) %v1927_v33, 8 }
 0x357   : > { %1936 = vxpose.xlu0.b32.cont [7/8] (short) (narrow) %v1928_v52, 8 }
 0x35b   : > { %1937 = vxpose.xlu0.b32.end [8/8] (short) (narrow) %v1929_v59, 8 }
 0x3bf   : > { %v1946_v46 = vpop.trf.xlu0 }
 0x3c0   : > { %v1962_v56 = vpack.c.bf16 %v1946_v46, %v1946_v46 }
 0x3c2   : > { %1964 = vst.msk [vmem:[%s283_s14] sm:$0xf] %vm1963_vm13, %v1962_v56 }
 0x3c3   : > { %2519 = shalt.err (!%p2516_p7)
}
 0x3c4   : > { %s2520_s9 = scalar_lea.hbm %s3268_s29, 64  ;;  %s2524_s14 = scalar_lea.hbm %s3327_s6, 256 }
 0x3c5   : > { %p2521_p9 = scmp.ne.s32.totalorder %s3268_s29, %s2520_s9  ;;  %p2525_p12 = scmp.lt.u32.totalorder %s3268_s29, %s3327_s6 }
 0x3c6   : > { %p2526_p13 = scmp.lt.u32.totalorder %s2524_s14, %s2520_s9  ;;  %p2528_p1 = scmp.lt.u32.totalorder %s2520_s9, %s3268_s29 }
 0x3c7   : > { %p2522_p10 = pnand %p2521_p9, %p2693_p3 }
 0x3c8   : > { %p2527_p0 = por %p2526_p13, %p2525_p12 }
 0x3c9   : > { %p2523_p11 = pneg %p2522_p10 }
 0x3ca   : > { %p2529_p2 = por %p2528_p1, %p2527_p0 }
 0x3cc   : > { %p2530_p4 = pnand %p2529_p2, %p2523_p11 }
 0x3ce   : > { %2533 = shalt.err (!%p2530_p4)
}
 0x3cf   : > { %2375 = dma.vmem_to_hbm [thread:$0]  (%p2693_p3), %s3270_s18, 64, %s3268_s29, %s1966_s30  }
 0x3d0 PF: > { %p2381_p5 = scmp.ge.s32.totalorder %s2600_s28, 2  ;;  %s1993_s25 = sand.u32 1, %s2572_s21  }
 0x3d1   : > { %s1994_s24 = scalar_lea.sflag [#allocation4], %s1993_s25 }
 0x3d2   : > { %p2378_p6 = pnand %p2381_p5, %p2702_p8 }
 0x3d4   : > { %2567 = dma.done.wait (!%p2378_p6), %s1994_s24, 64  }
 0x3d5   : > { %2569 = vsyncadd (!%p2378_p6), %s1994_s24, 4294967232  ;;  %s19_s28 = sadd.s32 1, %s2600_s28   ;;  %s3330_s21 = smov %s2576_s22 }
 0x3d6   : > { %p16_p7 = scmp.ge.s32.totalorder %s19_s28, 6   ;;  %s3331_s22 = smov %s2580_s23 }
 0x3d7   : > { %s3332_s23 = smov %s2711_s15  ;;  %s3333_s24 = smov %s2592_s26 }
 0x3d8   : > { %s3334_s25 = smov %s2596_s27  ;;  %s3335_s26 = smov %s3338_s7 }
 0x3d9   : > { %s3336_s27 = smov %s3342_s8  ;;  %18 = sbr.rel (!%p16_p7) target bundleno = 5 (0x5), region = 86 }
 0x3e0   :  { %1999 = vsyncpa [#allocation4], 1 }
 0x3e1   :  { %2001 = vsyncpa [#allocation4 + $0x1], 1 }

</bundles_post_ra>
